<compile_context>
chip_gen: v6e
topology: v6e:2x2x1
jax: 0.10.0
libtpu: 0.0.40
codegen_flags: <defaults>
</compile_context>

<pallas_src>
import jax
import jax.numpy as jnp
from jax.experimental import pallas as pl
from jax.experimental.pallas import tpu as pltpu


# ---------------------------------------------------------------------------
# helpers
# ---------------------------------------------------------------------------
def _cdiv(a, b):
    return -(-a // b)


def _vmem_budget_bytes():
    """~80% of physical per-core VMEM (v5e/v6e ~102 MiB, v7x ~51 MiB)."""
    cap = 64 * 1024 * 1024
    try:
        info = pltpu.get_tpu_info()
        cap = int(getattr(info, "vmem_capacity_bytes", cap)) or cap
    except Exception:
        pass
    return int(cap * 0.8)


def _conv_tiles(ho, wo, cin, cout, cs, os_, budget):
    """Pick (Cout tile, output-row tile) so the per-step working set fits VMEM.

    Prefers the largest Cout tile (full Cout first) so the parity planes are
    never re-fetched; falls back to 256/128 (divisors) when the weight tile
    would squeeze the row tile below ~8 rows.
    """
    cands = [cout] + [t for t in (256, 128) if cout % t == 0 and t < cout]
    usable = int(0.85 * budget)
    best = None
    for tn in cands:
        # weight + bias + the 3 halo rows of the even-row planes (double buffered)
        fixed = 2 * (9 * cin * tn * cs + tn * 4) + 2 * 3 * wo * cin * cs
        # per output row: 6 plane rows + output row (double buffered) + f32 acc row
        per_row = 2 * 6 * wo * cin * cs + 2 * wo * tn * os_ + wo * tn * 4
        th = (usable - fixed) // per_row if usable > fixed else 0
        th = int(max(0, min(ho, th)))
        if th >= min(ho, 8):
            return tn, th
        cand = (tn, max(1, th))
        if best is None or cand[1] > best[1]:
            best = cand
    return best


# ---------------------------------------------------------------------------
# Conv2d(Cin, Cout, kernel_size=3, stride=2, padding=1)   (use_conv=True)
# ---------------------------------------------------------------------------
def _conv3x3s2_kernel(pa0, pb0, pa1, pc0, pd0, pc1, w_ref, b_ref, o_ref, acc_ref):
    """9 taps = leading-dim slices of 6 parity planes, accumulated on the MXU.

    pa0/pb0/pa1 : (1, th+1, Wo, Cin)  even-(padded)-row planes (kx = 0/1/2)
    pc0/pd0/pc1 : (1, th,   Wo, Cin)  odd-(padded)-row  planes (kx = 0/1/2)
    w_ref       : (9, Cin, tn)        tap-major weight tile (t = 3*ky + kx)
    b_ref       : (1, tn)             f32 bias tile
    o_ref       : (1, th, Wo, tn)
    acc_ref     : (th*Wo, tn)         f32 VMEM accumulator scratch
    """
    _, th, wo, tn = o_ref.shape
    cin = w_ref.shape[1]
    rows = th * wo

    def tap(ref, dy):
        # leading-dim-only slice; last two dims are full => contiguous view
        return ref[0, dy:dy + th, :, :].reshape(rows, cin)

    # init from bias + first tap (no zero pass, no separate bias add)
    acc_ref[...] = b_ref[...] + jnp.dot(tap(pa0, 0), w_ref[0],
                                        preferred_element_type=jnp.float32)
    acc_ref[...] += jnp.dot(tap(pb0, 0), w_ref[1], preferred_element_type=jnp.float32)
    acc_ref[...] += jnp.dot(tap(pa1, 0), w_ref[2], preferred_element_type=jnp.float32)
    acc_ref[...] += jnp.dot(tap(pc0, 0), w_ref[3], preferred_element_type=jnp.float32)
    acc_ref[...] += jnp.dot(tap(pd0, 0), w_ref[4], preferred_element_type=jnp.float32)
    acc_ref[...] += jnp.dot(tap(pc1, 0), w_ref[5], preferred_element_type=jnp.float32)
    acc_ref[...] += jnp.dot(tap(pa0, 1), w_ref[6], preferred_element_type=jnp.float32)
    acc_ref[...] += jnp.dot(tap(pb0, 1), w_ref[7], preferred_element_type=jnp.float32)
    acc_ref[...] += jnp.dot(tap(pa1, 1), w_ref[8], preferred_element_type=jnp.float32)
    o_ref[...] = acc_ref[...].reshape(1, th, wo, tn).astype(o_ref.dtype)


def downsample_conv2d_nhwc(x_nhwc, weight, bias, *, compute_dtype=jnp.bfloat16):
    """Conv2d(Cin, Cout, 3, stride=2, padding=1) on an NHWC input, NHWC output."""
    N, H, W, C = x_nhwc.shape
    Cout = weight.shape[0]
    assert weight.shape == (Cout, C, 3, 3)
    Ho, Wo = (H + 1) // 2, (W + 1) // 2        # floor output size, like torch
    Hf, Wf = H // 2, W // 2
    out_dtype = x_nhwc.dtype
    cdt = jnp.dtype(compute_dtype) if compute_dtype is not None else jnp.dtype(out_dtype)
    cs, os_ = cdt.itemsize, jnp.dtype(out_dtype).itemsize

    budget = _vmem_budget_bytes()
    tn, th = _conv_tiles(Ho, Wo, C, Cout, cs, os_, budget)
    n_ct = Cout // tn
    n_rt = _cdiv(Ho, th)
    ho_pad = n_rt * th                          # padded row extent (masked on store)

    # ---- parity planes, built directly from x (no padded intermediate) -----
    # padded coords: xp[r, c] = x[r-1, c-1];  even padded rows <- odd x rows,
    # odd padded rows <- even x rows (and likewise for columns).
    xc = x_nhwc.astype(cdt)
    x_ee = xc[:, 0::2, 0::2, :]                 # (N, Ho, Wo, C)
    x_eo = xc[:, 0::2, 1::2, :]                 # (N, Ho, Wf, C)
    x_oe = xc[:, 1::2, 0::2, :]                 # (N, Hf, Wo, C)
    x_oo = xc[:, 1::2, 1::2, :]                 # (N, Hf, Wf, C)
    er = (1, ho_pad - Hf)                       # even-row planes: ho_pad+1 rows
    orr = (0, ho_pad - Ho)                      # odd-row planes:  ho_pad rows
    nz = (0, 0)
    pa0 = jnp.pad(x_oo[:, :, :Wo - 1, :], (nz, er, (1, 0), nz))        # ky∈{0,2}, kx=0
    pb0 = jnp.pad(x_oe,                   (nz, er, nz, nz))            # ky∈{0,2}, kx=1
    pa1 = jnp.pad(x_oo,                   (nz, er, (0, Wo - Wf), nz))  # ky∈{0,2}, kx=2
    pc0 = jnp.pad(x_eo[:, :, :Wo - 1, :], (nz, orr, (1, 0), nz))       # ky=1,     kx=0
    pd0 = jnp.pad(x_ee,                   (nz, orr, nz, nz))           # ky=1,     kx=1
    pc1 = jnp.pad(x_eo,                   (nz, orr, (0, Wo - Wf), nz)) # ky=1,     kx=2

    def tiles(p, halo):
        """(N, ho_pad+halo, Wo, C) -> (N*n_rt, th+halo, Wo, C) row tiles.

        Even-row planes carry a 1-row halo (duplicated boundary rows, a few
        extra bytes) so every BlockSpec stays plain Blocked (no overlap).
        """
        if n_rt == 1:
            return p
        if halo == 0:
            return p.reshape(N * n_rt, th, Wo, C)
        parts = [p[:, i * th:i * th + th + 1] for i in range(n_rt)]
        return jnp.stack(parts, axis=1).reshape(N * n_rt, th + 1, Wo, C)

    pa0, pb0, pa1 = tiles(pa0, 1), tiles(pb0, 1), tiles(pa1, 1)
    pc0, pd0, pc1 = tiles(pc0, 0), tiles(pd0, 0), tiles(pc1, 0)

    # torch (Cout, Cin, 3, 3) -> (ky, kx, Cin, Cout) -> (9, Cin, Cout)
    w = jnp.transpose(weight, (2, 3, 1, 0)).reshape(9, C, Cout).astype(cdt)
    b = bias.reshape(1, Cout).astype(jnp.float32)

    # ---- adaptive grid order: keep whichever operand is costlier resident ---
    plane_bytes = 6 * N * (ho_pad + 1) * Wo * C * cs
    weight_bytes = 9 * C * Cout * cs
    planes_resident = n_ct == 1 or (weight_bytes * N * n_rt) <= (plane_bytes * n_ct)

    if planes_resident:
        grid = (N, n_rt, n_ct)                   # Cout-tile innermost

        def pidx(n, i, j): return (n * n_rt + i, 0, 0, 0)
        def widx(n, i, j): return (0, 0, j)
        def bidx(n, i, j): return (0, j)
        def oidx(n, i, j): return (n, i, 0, j)
    else:
        grid = (n_ct, N, n_rt)                   # weight tile outermost / resident

        def pidx(j, n, i): return (n * n_rt + i, 0, 0, 0)
        def widx(j, n, i): return (0, 0, j)
        def bidx(j, n, i): return (0, j)
        def oidx(j, n, i): return (n, i, 0, j)

    pe_spec = pl.BlockSpec((1, th + 1, Wo, C), pidx)
    po_spec = pl.BlockSpec((1, th, Wo, C), pidx)
    w_spec = pl.BlockSpec((9, C, tn), widx)
    b_spec = pl.BlockSpec((1, tn), bidx)
    o_spec = pl.BlockSpec((1, th, Wo, tn), oidx)

    flops = 2 * N * Ho * Wo * 9 * C * Cout
    bytes_accessed = int(plane_bytes + weight_bytes + Cout * 4
                         + N * Ho * Wo * Cout * os_)

    out = pl.pallas_call(
        _conv3x3s2_kernel,
        out_shape=jax.ShapeDtypeStruct((N, Ho, Wo, Cout), out_dtype),
        grid=grid,
        in_specs=[pe_spec, pe_spec, pe_spec, po_spec, po_spec, po_spec,
                  w_spec, b_spec],
        out_specs=o_spec,
        scratch_shapes=[pltpu.VMEM((th * Wo, tn), jnp.float32)],
        compiler_params=pltpu.CompilerParams(
            dimension_semantics=("parallel", "parallel", "parallel"),
            vmem_limit_bytes=budget),
        cost_estimate=pl.CostEstimate(flops=int(flops), transcendentals=0,
                                      bytes_accessed=bytes_accessed),
    )(pa0, pb0, pa1, pc0, pd0, pc1, w, b)
    return out


def downsample_conv2d(x_nchw, weight, bias, *, compute_dtype=jnp.bfloat16):
    # NCHW -> NHWC glue.  Keep the surrounding model NHWC and call the *_nhwc
    # entry point directly to avoid these two extra HBM round trips.
    y = downsample_conv2d_nhwc(jnp.transpose(x_nchw, (0, 2, 3, 1)), weight, bias,
                               compute_dtype=compute_dtype)
    return jnp.transpose(y, (0, 3, 1, 2))


# ---------------------------------------------------------------------------
# AvgPool2d(kernel_size=2, stride=2)   (use_conv=False)
# ---------------------------------------------------------------------------
def _avgpool_fold_kernel(x_ref, o_ref):
    """x_ref: (1, 2*th, Wo, 2C) column-pair lane-folded; o_ref: (1, th, Wo, C).

    Only used when C % 128 == 0 so the s[..., :C] / s[..., C:] split is
    lane-aligned (no cross-lane rotate).  Sums run in the native dtype.
    """
    _, th, wo, c = o_ref.shape
    x = x_ref[0].reshape(th, 2, wo, 2 * c)       # split row pairs (free)
    s = x[:, 0] + x[:, 1]                        # row-pair sum  (th, Wo, 2C)
    s = s[:, :, :c] + s[:, :, c:]                # col-pair sum  (th, Wo, C)
    o_ref[...] = (0.25 * s).reshape(1, th, wo, c).astype(o_ref.dtype)


def _avgpool_pair_kernel(xe_ref, xo_ref, o_ref):
    """Even/odd-column inputs (1, 2*th, Wo, C) each; o_ref: (1, th, Wo, C)."""
    _, th, wo, c = o_ref.shape
    xe = xe_ref[0].reshape(th, 2, wo, c)
    xo = xo_ref[0].reshape(th, 2, wo, c)
    s = (xe[:, 0] + xe[:, 1]) + (xo[:, 0] + xo[:, 1])
    o_ref[...] = (0.25 * s).reshape(1, th, wo, c).astype(o_ref.dtype)


def downsample_avgpool2d_nhwc(x_nhwc):
    N, H, W, C = x_nhwc.shape
    Ho, Wo = H // 2, W // 2                      # floor, like torch AvgPool2d(2,2)
    x = x_nhwc[:, :2 * Ho, :2 * Wo, :]           # crop odd tail rows/cols
    itemsize = jnp.dtype(x.dtype).itemsize
    budget = _vmem_budget_bytes()

    # row tile: big as VMEM allows (mem-bound kernel), never the degenerate
    # "largest divisor" trap -- a non-dividing th just leaves a masked tail.
    per_row = 2 * (4 + 1) * Wo * C * itemsize    # in (4x) + out, double-buffered
    th = max(1, min(Ho, int(0.7 * budget) // max(1, per_row)))
    if th < Ho and th >= 4:
        th -= th % 4                             # keep 2*th sublane-aligned
    n_rt = _cdiv(Ho, th)
    cp = pltpu.CompilerParams(dimension_semantics=("parallel", "parallel"),
                              vmem_limit_bytes=budget)

    if C % 128 == 0:
        # free row-major reinterpretation: column pairs folded into the lane dim
        xf = x.reshape(N, 2 * Ho, Wo, 2 * C)
        return pl.pallas_call(
            _avgpool_fold_kernel,
            out_shape=jax.ShapeDtypeStruct((N, Ho, Wo, C), x.dtype),
            grid=(N, n_rt),
            in_specs=[pl.BlockSpec((1, 2 * th, Wo, 2 * C), lambda n, i: (n, i, 0, 0))],
            out_specs=pl.BlockSpec((1, th, Wo, C), lambda n, i: (n, i, 0, 0)),
            compiler_params=cp,
        )(xf)

    # C not lane-aligned: deinterleave even/odd columns in the wrapper so the
    # kernel only touches lane-contiguous full-C blocks.
    xe = x[:, :, 0::2, :]
    xo = x[:, :, 1::2, :]
    return pl.pallas_call(
        _avgpool_pair_kernel,
        out_shape=jax.ShapeDtypeStruct((N, Ho, Wo, C), x.dtype),
        grid=(N, n_rt),
        in_specs=[pl.BlockSpec((1, 2 * th, Wo, C), lambda n, i: (n, i, 0, 0)),
                  pl.BlockSpec((1, 2 * th, Wo, C), lambda n, i: (n, i, 0, 0))],
        out_specs=pl.BlockSpec((1, th, Wo, C), lambda n, i: (n, i, 0, 0)),
        compiler_params=cp,
    )(xe, xo)


def downsample_avgpool2d(x_nchw):
    y = downsample_avgpool2d_nhwc(jnp.transpose(x_nchw, (0, 2, 3, 1)))
    return jnp.transpose(y, (0, 3, 1, 2))


# ---------------------------------------------------------------------------
# Module wrapper
# ---------------------------------------------------------------------------
class DownSample:
    """JAX/Pallas port of the PyTorch DownSample module (dims=2)."""

    def __init__(self, channels, use_conv, dims=2, out_channels=None,
                 padding=1, key=None, compute_dtype=jnp.bfloat16):
        assert dims == 2, "only dims=2 implemented"  # TODO(synk): dims=1/3 variants
        assert padding == 1, "only padding=1 implemented"
        self.channels = channels
        self.out_channels = out_channels or channels
        self.use_conv = use_conv
        self.compute_dtype = compute_dtype          # MXU operand dtype; acc stays f32
        if use_conv:
            key = key if key is not None else jax.random.PRNGKey(0)
            kw, kb = jax.random.split(key)
            fan_in = channels * 9
            scale = 1.0 / jnp.sqrt(fan_in)
            self.weight = (jax.random.uniform(
                kw, (self.out_channels, channels, 3, 3), jnp.float32,
                minval=-1.0, maxval=1.0) * scale)
            self.bias = (jax.random.uniform(
                kb, (self.out_channels,), jnp.float32,
                minval=-1.0, maxval=1.0) * scale)
        else:
            assert self.channels == self.out_channels

    def __call__(self, x):
        assert x.shape[1] == self.channels
        if self.use_conv:
            return downsample_conv2d(x, self.weight, self.bias,
                                     compute_dtype=self.compute_dtype)
        return downsample_avgpool2d(x)


# ---------------------------------------------------------------------------
if __name__ == "__main__":
    key = jax.random.PRNGKey(0)
    kx, kp, kx2, kx3, kp3 = jax.random.split(key, 5)

    N, C, H, W = 2, 4, 16, 16
    Cout = 8
    x = jax.random.normal(kx, (N, C, H, W), jnp.float32)

    # --- use_conv=True path, f32 MXU operands (tight check) ---
    ds_conv = DownSample(C, use_conv=True, dims=2, out_channels=Cout, key=kp,
                         compute_dtype=jnp.float32)
    y_conv = jax.block_until_ready(ds_conv(x))
    assert y_conv.shape == (N, Cout, H // 2, W // 2), y_conv.shape

    w_hwio = jnp.transpose(ds_conv.weight, (2, 3, 1, 0))
    ref_conv = jax.lax.conv_general_dilated(
        x, w_hwio, window_strides=(2, 2), padding=((1, 1), (1, 1)),
        dimension_numbers=("NCHW", "HWIO", "NCHW"),
    ) + ds_conv.bias[None, :, None, None]
    assert jnp.allclose(y_conv, ref_conv, rtol=1e-2, atol=1e-2), \
        float(jnp.max(jnp.abs(y_conv - ref_conv)))

    # --- same conv via the default bf16 MXU operands (f32 accumulation) ---
    y_bf16 = jax.block_until_ready(
        downsample_conv2d(x, ds_conv.weight, ds_conv.bias))
    assert y_bf16.shape == (N, Cout, H // 2, W // 2)
    assert jnp.allclose(y_bf16, ref_conv, rtol=5e-2, atol=5e-2), \
        float(jnp.max(jnp.abs(y_bf16 - ref_conv)))

    # --- conv with odd spatial dims (floor output size, zero-pad taps) ---
    x3 = jax.random.normal(kx3, (1, 3, 9, 9), jnp.float32)
    ds3 = DownSample(3, use_conv=True, out_channels=4, key=kp3,
                     compute_dtype=jnp.float32)
    y3 = jax.block_until_ready(ds3(x3))
    assert y3.shape == (1, 4, 5, 5), y3.shape
    ref3 = jax.lax.conv_general_dilated(
        x3, jnp.transpose(ds3.weight, (2, 3, 1, 0)), (2, 2), ((1, 1), (1, 1)),
        dimension_numbers=("NCHW", "HWIO", "NCHW"),
    ) + ds3.bias[None, :, None, None]
    assert jnp.allclose(y3, ref3, rtol=1e-2, atol=1e-2), \
        float(jnp.max(jnp.abs(y3 - ref3)))

    # --- use_conv=False path, C not lane-aligned (two-input kernel) ---
    ds_pool = DownSample(C, use_conv=False, dims=2)
    y_pool = jax.block_until_ready(ds_pool(x))
    assert y_pool.shape == (N, C, H // 2, W // 2), y_pool.shape
    ref_pool = x.reshape(N, C, H // 2, 2, W // 2, 2).mean(axis=(3, 5))
    assert jnp.allclose(y_pool, ref_pool, rtol=1e-5, atol=1e-5)

    # --- use_conv=False path, C % 128 == 0 (lane-folded kernel) ---
    x2 = jax.random.normal(kx2, (1, 128, 8, 8), jnp.float32)
    y2 = jax.block_until_ready(downsample_avgpool2d(x2))
    assert y2.shape == (1, 128, 4, 4), y2.shape
    ref2 = x2.reshape(1, 128, 4, 2, 4, 2).mean(axis=(3, 5))
    assert jnp.allclose(y2, ref2, rtol=1e-5, atol=1e-5)

    print("KERNEL_OK")
</pallas_src>

<mosaic_0001>
module attributes {stable_mosaic.version = 11 : i64} {
  func.func @_conv3x3s2_kernel(%arg0: i32, %arg1: i32, %arg2: i32, %arg3: memref<1x9x8x4xf32, #tpu.memory_space<vmem>>, %arg4: memref<1x9x8x4xf32, #tpu.memory_space<vmem>>, %arg5: memref<1x9x8x4xf32, #tpu.memory_space<vmem>>, %arg6: memref<1x8x8x4xf32, #tpu.memory_space<vmem>>, %arg7: memref<1x8x8x4xf32, #tpu.memory_space<vmem>>, %arg8: memref<1x8x8x4xf32, #tpu.memory_space<vmem>>, %arg9: memref<9x4x8xf32, #tpu.memory_space<vmem>>, %arg10: memref<1x8xf32, #tpu.memory_space<vmem>>, %arg11: memref<1x8x8x8xf32, #tpu.memory_space<vmem>>, %arg12: memref<64x8xf32, #tpu.memory_space<vmem>>) attributes {dimension_semantics = [#tpu.dimension_semantics<parallel>, #tpu.dimension_semantics<parallel>, #tpu.dimension_semantics<parallel>], iteration_bounds = array<i64: 2, 1, 1>, scalar_prefetch = 0 : i64, scratch_operands = 1 : i64, tpu.core_type = #tpu.core_type<tc>, window_params = [{transform_indices = @transform_0, window_bounds = array<i64: 1, 9, 8, 4>}, {transform_indices = @transform_1, window_bounds = array<i64: 1, 9, 8, 4>}, {transform_indices = @transform_2, window_bounds = array<i64: 1, 9, 8, 4>}, {transform_indices = @transform_3, window_bounds = array<i64: 1, 8, 8, 4>}, {transform_indices = @transform_4, window_bounds = array<i64: 1, 8, 8, 4>}, {transform_indices = @transform_5, window_bounds = array<i64: 1, 8, 8, 4>}, {transform_indices = @transform_6, window_bounds = array<i64: 9, 4, 8>}, {transform_indices = @transform_7, window_bounds = array<i64: 1, 8>}, {transform_indices = @transform_8, window_bounds = array<i64: 1, 8, 8, 8>}]} {
    %c0 = arith.constant 0 : index
    %c0_0 = arith.constant 0 : index
    %0 = vector.load %arg10[%c0, %c0_0] : memref<1x8xf32, #tpu.memory_space<vmem>>, vector<1x8xf32>
    %c0_1 = arith.constant 0 : index
    %c0_2 = arith.constant 0 : index
    %c0_3 = arith.constant 0 : index
    %c0_4 = arith.constant 0 : index
    %1 = vector.load %arg3[%c0_1, %c0_2, %c0_3, %c0_4] : memref<1x9x8x4xf32, #tpu.memory_space<vmem>>, vector<1x8x8x4xf32>
    %2 = vector.shape_cast %1 : vector<1x8x8x4xf32> to vector<8x8x4xf32>
    %3 = vector.shape_cast %2 : vector<8x8x4xf32> to vector<64x4xf32>
    %c0_5 = arith.constant 0 : index
    %c0_6 = arith.constant 0 : index
    %c0_7 = arith.constant 0 : index
    %4 = vector.load %arg9[%c0_5, %c0_6, %c0_7] : memref<9x4x8xf32, #tpu.memory_space<vmem>>, vector<1x4x8xf32>
    %5 = vector.shape_cast %4 : vector<1x4x8xf32> to vector<4x8xf32>
    %cst = arith.constant dense<0.000000e+00> : vector<64x8xf32>
    %6 = tpu.matmul %3, %5, %cst {dimension_numbers = #tpu.dot_dimension_numbers<[1], [0], [0], [1], [0, 0, 1, 1], [], []>} : vector<64x4xf32>, vector<4x8xf32>, vector<64x8xf32> -> vector<64x8xf32>
    %7 = vector.broadcast %0 : vector<1x8xf32> to vector<64x8xf32>
    %8 = arith.addf %7, %6 : vector<64x8xf32>
    %c0_8 = arith.constant 0 : index
    %c0_9 = arith.constant 0 : index
    %9 = vector.load %arg12[%c0_8, %c0_9] : memref<64x8xf32, #tpu.memory_space<vmem>>, vector<64x8xf32>
    tpu.vector_store %arg12[%c0_8, %c0_9], %8 {strides = array<i32>} : memref<64x8xf32, #tpu.memory_space<vmem>>, vector<64x8xf32>,
    %c0_10 = arith.constant 0 : index
    %c0_11 = arith.constant 0 : index
    %10 = vector.load %arg12[%c0_10, %c0_11] : memref<64x8xf32, #tpu.memory_space<vmem>>, vector<64x8xf32>
    %c0_12 = arith.constant 0 : index
    %c0_13 = arith.constant 0 : index
    %c0_14 = arith.constant 0 : index
    %c0_15 = arith.constant 0 : index
    %11 = vector.load %arg4[%c0_12, %c0_13, %c0_14, %c0_15] : memref<1x9x8x4xf32, #tpu.memory_space<vmem>>, vector<1x8x8x4xf32>
    %12 = vector.shape_cast %11 : vector<1x8x8x4xf32> to vector<8x8x4xf32>
    %13 = vector.shape_cast %12 : vector<8x8x4xf32> to vector<64x4xf32>
    %c1 = arith.constant 1 : index
    %c0_16 = arith.constant 0 : index
    %c0_17 = arith.constant 0 : index
    %14 = vector.load %arg9[%c1, %c0_16, %c0_17] : memref<9x4x8xf32, #tpu.memory_space<vmem>>, vector<1x4x8xf32>
    %15 = vector.shape_cast %14 : vector<1x4x8xf32> to vector<4x8xf32>
    %cst_18 = arith.constant dense<0.000000e+00> : vector<64x8xf32>
    %16 = tpu.matmul %13, %15, %cst_18 {dimension_numbers = #tpu.dot_dimension_numbers<[1], [0], [0], [1], [0, 0, 1, 1], [], []>} : vector<64x4xf32>, vector<4x8xf32>, vector<64x8xf32> -> vector<64x8xf32>
    %17 = arith.addf %10, %16 : vector<64x8xf32>
    %c0_19 = arith.constant 0 : index
    %c0_20 = arith.constant 0 : index
    %18 = vector.load %arg12[%c0_19, %c0_20] : memref<64x8xf32, #tpu.memory_space<vmem>>, vector<64x8xf32>
    tpu.vector_store %arg12[%c0_19, %c0_20], %17 {strides = array<i32>} : memref<64x8xf32, #tpu.memory_space<vmem>>, vector<64x8xf32>,
    %c0_21 = arith.constant 0 : index
    %c0_22 = arith.constant 0 : index
    %19 = vector.load %arg12[%c0_21, %c0_22] : memref<64x8xf32, #tpu.memory_space<vmem>>, vector<64x8xf32>
    %c0_23 = arith.constant 0 : index
    %c0_24 = arith.constant 0 : index
    %c0_25 = arith.constant 0 : index
    %c0_26 = arith.constant 0 : index
    %20 = vector.load %arg5[%c0_23, %c0_24, %c0_25, %c0_26] : memref<1x9x8x4xf32, #tpu.memory_space<vmem>>, vector<1x8x8x4xf32>
    %21 = vector.shape_cast %20 : vector<1x8x8x4xf32> to vector<8x8x4xf32>
    %22 = vector.shape_cast %21 : vector<8x8x4xf32> to vector<64x4xf32>
    %c2 = arith.constant 2 : index
    %c0_27 = arith.constant 0 : index
    %c0_28 = arith.constant 0 : index
    %23 = vector.load %arg9[%c2, %c0_27, %c0_28] : memref<9x4x8xf32, #tpu.memory_space<vmem>>, vector<1x4x8xf32>
    %24 = vector.shape_cast %23 : vector<1x4x8xf32> to vector<4x8xf32>
    %cst_29 = arith.constant dense<0.000000e+00> : vector<64x8xf32>
    %25 = tpu.matmul %22, %24, %cst_29 {dimension_numbers = #tpu.dot_dimension_numbers<[1], [0], [0], [1], [0, 0, 1, 1], [], []>} : vector<64x4xf32>, vector<4x8xf32>, vector<64x8xf32> -> vector<64x8xf32>
    %26 = arith.addf %19, %25 : vector<64x8xf32>
    %c0_30 = arith.constant 0 : index
    %c0_31 = arith.constant 0 : index
    %27 = vector.load %arg12[%c0_30, %c0_31] : memref<64x8xf32, #tpu.memory_space<vmem>>, vector<64x8xf32>
    tpu.vector_store %arg12[%c0_30, %c0_31], %26 {strides = array<i32>} : memref<64x8xf32, #tpu.memory_space<vmem>>, vector<64x8xf32>,
    %c0_32 = arith.constant 0 : index
    %c0_33 = arith.constant 0 : index
    %28 = vector.load %arg12[%c0_32, %c0_33] : memref<64x8xf32, #tpu.memory_space<vmem>>, vector<64x8xf32>
    %c0_34 = arith.constant 0 : index
    %c0_35 = arith.constant 0 : index
    %c0_36 = arith.constant 0 : index
    %c0_37 = arith.constant 0 : index
    %29 = vector.load %arg6[%c0_34, %c0_35, %c0_36, %c0_37] : memref<1x8x8x4xf32, #tpu.memory_space<vmem>>, vector<1x8x8x4xf32>
    %30 = vector.shape_cast %29 : vector<1x8x8x4xf32> to vector<8x8x4xf32>
    %31 = vector.shape_cast %30 : vector<8x8x4xf32> to vector<64x4xf32>
    %c3 = arith.constant 3 : index
    %c0_38 = arith.constant 0 : index
    %c0_39 = arith.constant 0 : index
    %32 = vector.load %arg9[%c3, %c0_38, %c0_39] : memref<9x4x8xf32, #tpu.memory_space<vmem>>, vector<1x4x8xf32>
    %33 = vector.shape_cast %32 : vector<1x4x8xf32> to vector<4x8xf32>
    %cst_40 = arith.constant dense<0.000000e+00> : vector<64x8xf32>
    %34 = tpu.matmul %31, %33, %cst_40 {dimension_numbers = #tpu.dot_dimension_numbers<[1], [0], [0], [1], [0, 0, 1, 1], [], []>} : vector<64x4xf32>, vector<4x8xf32>, vector<64x8xf32> -> vector<64x8xf32>
    %35 = arith.addf %28, %34 : vector<64x8xf32>
    %c0_41 = arith.constant 0 : index
    %c0_42 = arith.constant 0 : index
    %36 = vector.load %arg12[%c0_41, %c0_42] : memref<64x8xf32, #tpu.memory_space<vmem>>, vector<64x8xf32>
    tpu.vector_store %arg12[%c0_41, %c0_42], %35 {strides = array<i32>} : memref<64x8xf32, #tpu.memory_space<vmem>>, vector<64x8xf32>,
    %c0_43 = arith.constant 0 : index
    %c0_44 = arith.constant 0 : index
    %37 = vector.load %arg12[%c0_43, %c0_44] : memref<64x8xf32, #tpu.memory_space<vmem>>, vector<64x8xf32>
    %c0_45 = arith.constant 0 : index
    %c0_46 = arith.constant 0 : index
    %c0_47 = arith.constant 0 : index
    %c0_48 = arith.constant 0 : index
    %38 = vector.load %arg7[%c0_45, %c0_46, %c0_47, %c0_48] : memref<1x8x8x4xf32, #tpu.memory_space<vmem>>, vector<1x8x8x4xf32>
    %39 = vector.shape_cast %38 : vector<1x8x8x4xf32> to vector<8x8x4xf32>
    %40 = vector.shape_cast %39 : vector<8x8x4xf32> to vector<64x4xf32>
    %c4 = arith.constant 4 : index
    %c0_49 = arith.constant 0 : index
    %c0_50 = arith.constant 0 : index
    %41 = vector.load %arg9[%c4, %c0_49, %c0_50] : memref<9x4x8xf32, #tpu.memory_space<vmem>>, vector<1x4x8xf32>
    %42 = vector.shape_cast %41 : vector<1x4x8xf32> to vector<4x8xf32>
    %cst_51 = arith.constant dense<0.000000e+00> : vector<64x8xf32>
    %43 = tpu.matmul %40, %42, %cst_51 {dimension_numbers = #tpu.dot_dimension_numbers<[1], [0], [0], [1], [0, 0, 1, 1], [], []>} : vector<64x4xf32>, vector<4x8xf32>, vector<64x8xf32> -> vector<64x8xf32>
    %44 = arith.addf %37, %43 : vector<64x8xf32>
    %c0_52 = arith.constant 0 : index
    %c0_53 = arith.constant 0 : index
    %45 = vector.load %arg12[%c0_52, %c0_53] : memref<64x8xf32, #tpu.memory_space<vmem>>, vector<64x8xf32>
    tpu.vector_store %arg12[%c0_52, %c0_53], %44 {strides = array<i32>} : memref<64x8xf32, #tpu.memory_space<vmem>>, vector<64x8xf32>,
    %c0_54 = arith.constant 0 : index
    %c0_55 = arith.constant 0 : index
    %46 = vector.load %arg12[%c0_54, %c0_55] : memref<64x8xf32, #tpu.memory_space<vmem>>, vector<64x8xf32>
    %c0_56 = arith.constant 0 : index
    %c0_57 = arith.constant 0 : index
    %c0_58 = arith.constant 0 : index
    %c0_59 = arith.constant 0 : index
    %47 = vector.load %arg8[%c0_56, %c0_57, %c0_58, %c0_59] : memref<1x8x8x4xf32, #tpu.memory_space<vmem>>, vector<1x8x8x4xf32>
    %48 = vector.shape_cast %47 : vector<1x8x8x4xf32> to vector<8x8x4xf32>
    %49 = vector.shape_cast %48 : vector<8x8x4xf32> to vector<64x4xf32>
    %c5 = arith.constant 5 : index
    %c0_60 = arith.constant 0 : index
    %c0_61 = arith.constant 0 : index
    %50 = vector.load %arg9[%c5, %c0_60, %c0_61] : memref<9x4x8xf32, #tpu.memory_space<vmem>>, vector<1x4x8xf32>
    %51 = vector.shape_cast %50 : vector<1x4x8xf32> to vector<4x8xf32>
    %cst_62 = arith.constant dense<0.000000e+00> : vector<64x8xf32>
    %52 = tpu.matmul %49, %51, %cst_62 {dimension_numbers = #tpu.dot_dimension_numbers<[1], [0], [0], [1], [0, 0, 1, 1], [], []>} : vector<64x4xf32>, vector<4x8xf32>, vector<64x8xf32> -> vector<64x8xf32>
    %53 = arith.addf %46, %52 : vector<64x8xf32>
    %c0_63 = arith.constant 0 : index
    %c0_64 = arith.constant 0 : index
    %54 = vector.load %arg12[%c0_63, %c0_64] : memref<64x8xf32, #tpu.memory_space<vmem>>, vector<64x8xf32>
    tpu.vector_store %arg12[%c0_63, %c0_64], %53 {strides = array<i32>} : memref<64x8xf32, #tpu.memory_space<vmem>>, vector<64x8xf32>,
    %c0_65 = arith.constant 0 : index
    %c0_66 = arith.constant 0 : index
    %55 = vector.load %arg12[%c0_65, %c0_66] : memref<64x8xf32, #tpu.memory_space<vmem>>, vector<64x8xf32>
    %c0_67 = arith.constant 0 : index
    %c1_68 = arith.constant 1 : index
    %c0_69 = arith.constant 0 : index
    %c0_70 = arith.constant 0 : index
    %56 = vector.load %arg3[%c0_67, %c1_68, %c0_69, %c0_70] : memref<1x9x8x4xf32, #tpu.memory_space<vmem>>, vector<1x8x8x4xf32>
    %57 = vector.shape_cast %56 : vector<1x8x8x4xf32> to vector<8x8x4xf32>
    %58 = vector.shape_cast %57 : vector<8x8x4xf32> to vector<64x4xf32>
    %c6 = arith.constant 6 : index
    %c0_71 = arith.constant 0 : index
    %c0_72 = arith.constant 0 : index
    %59 = vector.load %arg9[%c6, %c0_71, %c0_72] : memref<9x4x8xf32, #tpu.memory_space<vmem>>, vector<1x4x8xf32>
    %60 = vector.shape_cast %59 : vector<1x4x8xf32> to vector<4x8xf32>
    %cst_73 = arith.constant dense<0.000000e+00> : vector<64x8xf32>
    %61 = tpu.matmul %58, %60, %cst_73 {dimension_numbers = #tpu.dot_dimension_numbers<[1], [0], [0], [1], [0, 0, 1, 1], [], []>} : vector<64x4xf32>, vector<4x8xf32>, vector<64x8xf32> -> vector<64x8xf32>
    %62 = arith.addf %55, %61 : vector<64x8xf32>
    %c0_74 = arith.constant 0 : index
    %c0_75 = arith.constant 0 : index
    %63 = vector.load %arg12[%c0_74, %c0_75] : memref<64x8xf32, #tpu.memory_space<vmem>>, vector<64x8xf32>
    tpu.vector_store %arg12[%c0_74, %c0_75], %62 {strides = array<i32>} : memref<64x8xf32, #tpu.memory_space<vmem>>, vector<64x8xf32>,
    %c0_76 = arith.constant 0 : index
    %c0_77 = arith.constant 0 : index
    %64 = vector.load %arg12[%c0_76, %c0_77] : memref<64x8xf32, #tpu.memory_space<vmem>>, vector<64x8xf32>
    %c0_78 = arith.constant 0 : index
    %c1_79 = arith.constant 1 : index
    %c0_80 = arith.constant 0 : index
    %c0_81 = arith.constant 0 : index
    %65 = vector.load %arg4[%c0_78, %c1_79, %c0_80, %c0_81] : memref<1x9x8x4xf32, #tpu.memory_space<vmem>>, vector<1x8x8x4xf32>
    %66 = vector.shape_cast %65 : vector<1x8x8x4xf32> to vector<8x8x4xf32>
    %67 = vector.shape_cast %66 : vector<8x8x4xf32> to vector<64x4xf32>
    %c7 = arith.constant 7 : index
    %c0_82 = arith.constant 0 : index
    %c0_83 = arith.constant 0 : index
    %68 = vector.load %arg9[%c7, %c0_82, %c0_83] : memref<9x4x8xf32, #tpu.memory_space<vmem>>, vector<1x4x8xf32>
    %69 = vector.shape_cast %68 : vector<1x4x8xf32> to vector<4x8xf32>
    %cst_84 = arith.constant dense<0.000000e+00> : vector<64x8xf32>
    %70 = tpu.matmul %67, %69, %cst_84 {dimension_numbers = #tpu.dot_dimension_numbers<[1], [0], [0], [1], [0, 0, 1, 1], [], []>} : vector<64x4xf32>, vector<4x8xf32>, vector<64x8xf32> -> vector<64x8xf32>
    %71 = arith.addf %64, %70 : vector<64x8xf32>
    %c0_85 = arith.constant 0 : index
    %c0_86 = arith.constant 0 : index
    %72 = vector.load %arg12[%c0_85, %c0_86] : memref<64x8xf32, #tpu.memory_space<vmem>>, vector<64x8xf32>
    tpu.vector_store %arg12[%c0_85, %c0_86], %71 {strides = array<i32>} : memref<64x8xf32, #tpu.memory_space<vmem>>, vector<64x8xf32>,
    %c0_87 = arith.constant 0 : index
    %c0_88 = arith.constant 0 : index
    %73 = vector.load %arg12[%c0_87, %c0_88] : memref<64x8xf32, #tpu.memory_space<vmem>>, vector<64x8xf32>
    %c0_89 = arith.constant 0 : index
    %c1_90 = arith.constant 1 : index
    %c0_91 = arith.constant 0 : index
    %c0_92 = arith.constant 0 : index
    %74 = vector.load %arg5[%c0_89, %c1_90, %c0_91, %c0_92] : memref<1x9x8x4xf32, #tpu.memory_space<vmem>>, vector<1x8x8x4xf32>
    %75 = vector.shape_cast %74 : vector<1x8x8x4xf32> to vector<8x8x4xf32>
    %76 = vector.shape_cast %75 : vector<8x8x4xf32> to vector<64x4xf32>
    %c8 = arith.constant 8 : index
    %c0_93 = arith.constant 0 : index
    %c0_94 = arith.constant 0 : index
    %77 = vector.load %arg9[%c8, %c0_93, %c0_94] : memref<9x4x8xf32, #tpu.memory_space<vmem>>, vector<1x4x8xf32>
    %78 = vector.shape_cast %77 : vector<1x4x8xf32> to vector<4x8xf32>
    %cst_95 = arith.constant dense<0.000000e+00> : vector<64x8xf32>
    %79 = tpu.matmul %76, %78, %cst_95 {dimension_numbers = #tpu.dot_dimension_numbers<[1], [0], [0], [1], [0, 0, 1, 1], [], []>} : vector<64x4xf32>, vector<4x8xf32>, vector<64x8xf32> -> vector<64x8xf32>
    %80 = arith.addf %73, %79 : vector<64x8xf32>
    %c0_96 = arith.constant 0 : index
    %c0_97 = arith.constant 0 : index
    %81 = vector.load %arg12[%c0_96, %c0_97] : memref<64x8xf32, #tpu.memory_space<vmem>>, vector<64x8xf32>
    tpu.vector_store %arg12[%c0_96, %c0_97], %80 {strides = array<i32>} : memref<64x8xf32, #tpu.memory_space<vmem>>, vector<64x8xf32>,
    %c0_98 = arith.constant 0 : index
    %c0_99 = arith.constant 0 : index
    %82 = vector.load %arg12[%c0_98, %c0_99] : memref<64x8xf32, #tpu.memory_space<vmem>>, vector<64x8xf32>
    %83 = vector.shape_cast %82 : vector<64x8xf32> to vector<1x8x8x8xf32>
    %c0_100 = arith.constant 0 : index
    %c0_101 = arith.constant 0 : index
    %c0_102 = arith.constant 0 : index
    %c0_103 = arith.constant 0 : index
    %84 = vector.load %arg11[%c0_100, %c0_101, %c0_102, %c0_103] : memref<1x8x8x8xf32, #tpu.memory_space<vmem>>, vector<1x8x8x8xf32>
    tpu.vector_store %arg11[%c0_100, %c0_101, %c0_102, %c0_103], %83 {strides = array<i32>} : memref<1x8x8x8xf32, #tpu.memory_space<vmem>>, vector<1x8x8x8xf32>,
    return
  }
  func.func @transform_0(%arg0: i32, %arg1: i32, %arg2: i32) -> (i32, i32, i32, i32) {
    %c1_i32 = arith.constant 1 : i32
    %0 = arith.muli %arg0, %c1_i32 : i32
    %1 = arith.addi %0, %arg1 : i32
    %c0_i32 = arith.constant 0 : i32
    %c0_i32_0 = arith.constant 0 : i32
    %c0_i32_1 = arith.constant 0 : i32
    %c0_i32_2 = arith.constant 0 : i32
    return %1, %c0_i32, %c0_i32_0, %c0_i32_1 : i32, i32, i32, i32
  }
  func.func @transform_1(%arg0: i32, %arg1: i32, %arg2: i32) -> (i32, i32, i32, i32) {
    %c1_i32 = arith.constant 1 : i32
    %0 = arith.muli %arg0, %c1_i32 : i32
    %1 = arith.addi %0, %arg1 : i32
    %c0_i32 = arith.constant 0 : i32
    %c0_i32_0 = arith.constant 0 : i32
    %c0_i32_1 = arith.constant 0 : i32
    %c0_i32_2 = arith.constant 0 : i32
    return %1, %c0_i32, %c0_i32_0, %c0_i32_1 : i32, i32, i32, i32
  }
  func.func @transform_2(%arg0: i32, %arg1: i32, %arg2: i32) -> (i32, i32, i32, i32) {
    %c1_i32 = arith.constant 1 : i32
    %0 = arith.muli %arg0, %c1_i32 : i32
    %1 = arith.addi %0, %arg1 : i32
    %c0_i32 = arith.constant 0 : i32
    %c0_i32_0 = arith.constant 0 : i32
    %c0_i32_1 = arith.constant 0 : i32
    %c0_i32_2 = arith.constant 0 : i32
    return %1, %c0_i32, %c0_i32_0, %c0_i32_1 : i32, i32, i32, i32
  }
  func.func @transform_3(%arg0: i32, %arg1: i32, %arg2: i32) -> (i32, i32, i32, i32) {
    %c1_i32 = arith.constant 1 : i32
    %0 = arith.muli %arg0, %c1_i32 : i32
    %1 = arith.addi %0, %arg1 : i32
    %c0_i32 = arith.constant 0 : i32
    %c0_i32_0 = arith.constant 0 : i32
    %c0_i32_1 = arith.constant 0 : i32
    %c0_i32_2 = arith.constant 0 : i32
    return %1, %c0_i32, %c0_i32_0, %c0_i32_1 : i32, i32, i32, i32
  }
  func.func @transform_4(%arg0: i32, %arg1: i32, %arg2: i32) -> (i32, i32, i32, i32) {
    %c1_i32 = arith.constant 1 : i32
    %0 = arith.muli %arg0, %c1_i32 : i32
    %1 = arith.addi %0, %arg1 : i32
    %c0_i32 = arith.constant 0 : i32
    %c0_i32_0 = arith.constant 0 : i32
    %c0_i32_1 = arith.constant 0 : i32
    %c0_i32_2 = arith.constant 0 : i32
    return %1, %c0_i32, %c0_i32_0, %c0_i32_1 : i32, i32, i32, i32
  }
  func.func @transform_5(%arg0: i32, %arg1: i32, %arg2: i32) -> (i32, i32, i32, i32) {
    %c1_i32 = arith.constant 1 : i32
    %0 = arith.muli %arg0, %c1_i32 : i32
    %1 = arith.addi %0, %arg1 : i32
    %c0_i32 = arith.constant 0 : i32
    %c0_i32_0 = arith.constant 0 : i32
    %c0_i32_1 = arith.constant 0 : i32
    %c0_i32_2 = arith.constant 0 : i32
    return %1, %c0_i32, %c0_i32_0, %c0_i32_1 : i32, i32, i32, i32
  }
  func.func @transform_6(%arg0: i32, %arg1: i32, %arg2: i32) -> (i32, i32, i32) {
    %c0_i32 = arith.constant 0 : i32
    %c0_i32_0 = arith.constant 0 : i32
    %c0_i32_1 = arith.constant 0 : i32
    return %c0_i32, %c0_i32_0, %arg2 : i32, i32, i32
  }
  func.func @transform_7(%arg0: i32, %arg1: i32, %arg2: i32) -> (i32, i32) {
    %c0_i32 = arith.constant 0 : i32
    %c0_i32_0 = arith.constant 0 : i32
    return %c0_i32, %arg2 : i32, i32
  }
  func.func @transform_8(%arg0: i32, %arg1: i32, %arg2: i32) -> (i32, i32, i32, i32) {
    %c0_i32 = arith.constant 0 : i32
    %c0_i32_0 = arith.constant 0 : i32
    return %arg0, %arg1, %c0_i32, %arg2 : i32, i32, i32, i32
  }
}

</mosaic_0001>

<bundles_post_ra>
// kernel: tpu_custom_call.1
= control target key start
LH: loop header
LB: loop body
LE: loop exit
PB: predicated region body
PF: predicated region fallthrough
CT: control target
= control target key end

     0   :  { %13 = vsyncpa [#allocation4], 0  ;;  %s3232_s0 = inlined_call_operand.vmem [shape: f32[2,9,8,4], index: 0, kind: input, shape index: {}]   ;;  %s3233_s1 = inlined_call_operand.vmem [shape: f32[2,9,8,4], index: 1, kind: input, shape index: {}]   ;;  %s3234_s2 = inlined_call_operand.vmem [shape: f32[2,9,8,4], index: 2, kind: input, shape index: {}]   ;;  %s3235_s3 = inlined_call_operand.vmem [shape: f32[2,8,8,4], index: 3, kind: input, shape index: {}]   ;;  %s3236_s4 = inlined_call_operand.vmem [shape: f32[2,8,8,4], index: 4, kind: input, shape index: {}]   ;;  %s3237_s5 = inlined_call_operand.vmem [shape: f32[2,8,8,4], index: 5, kind: input, shape index: {}]   ;;  %s3238_s6 = inlined_call_operand.vmem [shape: f32[9,4,8], index: 6, kind: input, shape index: {}]   ;;  %s3239_s7 = inlined_call_operand.vmem [shape: f32[1,8], index: 7, kind: input, shape index: {}]   ;;  %s3240_s8 = inlined_call_operand.hbm [shape: f32[2,8,8,8], index: 8, kind: output, shape index: {}]  }
   0x1   :  { %15 = vsyncpa [#allocation4 + $0x1], 0  ;;  %s2729_s27 = smov 0   ;;  %s2731_s28 = smov 0  }
   0x2   :  { %s2733_s29 = smov 0   ;;  %s2735_s30 = smov 0  }
   0x3   :  { %s2737_s9 = smov 0   ;;  %s2739_s10 = smov 0  }
   0x4 LB: > { %s2196_s11 = sadd.s32 4294967295, %s2679_s10   ;;  %s2197_s12 = sadd.s32 4294967294, %s2679_s10   ;;  %s2679_s10 = sphi %s2739_s10, %s21_s10   ;;  %s2675_s9 = sphi %s2737_s9, %s3247_s9   ;;  %s2671_s30 = sphi %s2735_s30, %s3246_s30   ;;  %s2667_s29 = sphi %s2733_s29, %s3245_s29   ;;  %s2663_s28 = sphi %s2731_s28, %s3244_s28   ;;  %s2659_s27 = sphi %s2729_s27, %s3243_s27  }
   0x5   : > { %s40_s13 = sadd.s32 1, %s2675_s9  ;;  %s271_s14 = sadd.s32 1, %s2667_s29 }
   0x6   : > { %p42_p0 = scmp.ge.s32.totalorder %s40_s13, 2  ;;  %p281_p1 = scmp.ne.s32.totalorder %s2667_s29, %s2663_s28 }
   0x7   : > { %p282_p2 = scmp.eq.s32.totalorder %s2196_s11, 1  ;;  %p287_p3 = scmp.ne.s32.totalorder %s2663_s28, %s2659_s27 }
   0x8   : > { %s3249_s13 = smov (%p42_p0, %s40_s13), 0  ;;  %p288_p5 = scmp.eq.s32.totalorder %s2197_s12, 1 }
   0x9   : > { %p2769_p4 = por %p282_p2, %p281_p1  ;;  %s264_s16 = ssub.s32 %s2675_s9, %s3249_s13 }
   0xa   : > { %p2202_p6 = scmp.ge.s32.totalorder %s2679_s10, 1  ;;  %p269_p7 = scmp.eq.s32.totalorder %s264_s16, 0 }
   0xb   : > { %p2776_p8 = por %p288_p5, %p287_p3  ;;  %p379_p9 = scmp.lt.s32.totalorder %s2679_s10, 3 }
   0xc   : > { %s2782_s18 = scalar_select %p269_p7, %s2667_s29, %s271_s14  }
   0xd   : > { %p380_p10 = pnand %p2202_p6, %p379_p9 }
   0xe   : > { %p452_p11 = scmp.lt.s32.totalorder (!%p380_p10), %s2671_s30, 1 }
   0xf   : > { %383 = sbr.rel (%p380_p10) target bundleno = 337 (0x151), region = 52 }
  0x14   : > { %v510_v0 = vld [vmem:[%s3238_s6] sm:$0xf]  ;;  %vm536_vm0 = vcmask 1043456   ;;  %v2223_v1 = vld [vmem:[%s3238_s6 + $0x4] sm:$0xf]  ;;  %s2799_s25 = scalar_select %p452_p11, %s2671_s30, 1 }
  0x15   : > { %2543 = vmatprep.subr.msk.mxu1 %vm536_vm0, %v510_v0  ;;  %2417 = vmatprep.subr.msk.mxu0 %vm536_vm0, %v510_v0  ;;  %v2233_v2 = vld [vmem:[%s3238_s6 + $0x8] sm:$0xf]  ;;  %vm511_vm1 = vcmask 31744   ;;  %v2243_v9 = vld [vmem:[%s3238_s6 + $0xc] sm:$0xf]  ;;  %vm659_vm2 = vcmask 64512  }
  0x16   : > { %2544 = vmatpush3.msk.msra.mxu1 %vm536_vm0, %v510_v0  ;;  %2418 = vmatpush3.msk.msra.mxu0 %vm536_vm0, %v510_v0  ;;  %s2545_s26 = smul.u32 72, %s2799_s25  ;;  %v2253_v10 = vld [vmem:[%s3238_s6 + $0x10] sm:$0xf]  ;;  %v2263_v19 = vld [vmem:[%s3238_s6 + $0x14] sm:$0xf]  ;;  %s2917_s24 = sshll.u32 %s2799_s25, 6 }
  0x17   : > { %2431 = vmatprep.subr.msk.mxu1 %vm536_vm0, %v2223_v1  ;;  %2445 = vmatprep.subr.msk.mxu0 %vm536_vm0, %v2233_v2  ;;  %v2281_v20 = vld [vmem:[%s3238_s6 + $0x18] sm:$0xf]  ;;  %s2939_s25 = scalar_lea.vmem %s3235_s3, %s2917_s24  ;;  %s2945_s19 = scalar_lea.vmem %s3236_s4, %s2917_s24  ;;  %v2299_v37 = vld [vmem:[%s3238_s6 + $0x1c] sm:$0xf]  ;;  %v2317_v38 = vld [vmem:[%s3238_s6 + $0x20] sm:$0xf] }
  0x18   : > { %s2807_s14 = scalar_lea.vmem %s3232_s0, %s2545_s26  ;;  %s2831_s20 = scalar_lea.vmem %s3233_s1, %s2545_s26  ;;  %v1008_v31 = vld [vmem:[%s2939_s25] sm:$0xff]  ;;  %v1009_v33 = vld [vmem:[%s2939_s25 + $0x8] sm:$0xff]  ;;  %v1010_v35 = vld [vmem:[%s2939_s25 + $0x10] sm:$0xff] }
  0x19   : > { %v502_v3 = vld [vmem:[%s2807_s14] sm:$0xff]  ;;  %v2814_v5 = vld [vmem:[%s2807_s14 + $0x8] sm:$0xff]  ;;  %v2823_v7 = vld [vmem:[%s2807_s14 + $0x10] sm:$0xff]  ;;  %s2836_s23 = scalar_lea.vmem %s3234_s2, %s2545_s26  ;;  %s3003_s21 = scalar_lea.vmem %s3237_s5, %s2917_s24 }
  0x1a   : > { %v2811_v4 = vld [vmem:[%s2807_s14 + $0x20] sm:$0xff]  ;;  %2419 = vmatprep.mubr.msk.f32.mxu0 %vm511_vm1, %v502_v3  ;;  %v2820_v6 = vld [vmem:[%s2807_s14 + $0x28] sm:$0xff]  ;;  %v2826_v8 = vld [vmem:[%s2807_s14 + $0x30] sm:$0xff] }
  0x1b   : > { %2425 = vmatprep.mubr.msk.f32.mxu1 %vm511_vm1, %v2811_v4  ;;  %2420 = vmatmul.mubr.msk.f32.vlgmr.msra.gmra.mxu0 %vm511_vm1, %v2814_v5  ;;  %v2852_v11 = vld [vmem:[%s2807_s14 + $0x18] sm:$0xff]  ;;  %v676_v13 = vld [vmem:[%s2831_s20] sm:$0xff]  ;;  %v2870_v15 = vld [vmem:[%s2831_s20 + $0x8] sm:$0xff] }
  0x1c   : > { %2426 = vmatmul.mubr.msk.f32.vlgmr.msra.gmra.mxu1 %vm511_vm1, %v2820_v6  ;;  %2422 = vmatprep.mubr.msk.f32.mxu0 %vm511_vm1, %v2823_v7  ;;  %v2855_v12 = vld [vmem:[%s2807_s14 + $0x38] sm:$0xff]  ;;  %v842_v14 = vld [vmem:[%s2836_s23] sm:$0xff]  ;;  %v2874_v16 = vld [vmem:[%s2836_s23 + $0x8] sm:$0xff] }
  0x1d   : > { %2432 = vmatpush3.msk.msra.mxu1 %vm536_vm0, %v2223_v1  ;;  %2428 = vmatprep.mubr.msk.f32.mxu1 %vm511_vm1, %v2826_v8  ;;  %v2877_v17 = vld [vmem:[%s2831_s20 + $0x10] sm:$0xff]  ;;  %v2895_v21 = vld [vmem:[%s2831_s20 + $0x18] sm:$0xff]  ;;  %v2902_v23 = vld [vmem:[%s2831_s20 + $0x20] sm:$0xff] }
  0x1e   : > { %2446 = vmatpush3.msk.msra.mxu0 %vm536_vm0, %v2233_v2  ;;  %2459 = vmatprep.subr.msk.mxu1 %vm536_vm0, %v2243_v9  ;;  %v2880_v18 = vld [vmem:[%s2836_s23 + $0x10] sm:$0xff]  ;;  %v2899_v22 = vld [vmem:[%s2836_s23 + $0x18] sm:$0xff]  ;;  %v2908_v24 = vld [vmem:[%s2836_s23 + $0x20] sm:$0xff] }
  0x1f   : > { %2473 = vmatprep.subr.msk.mxu0 %vm536_vm0, %v2253_v10  ;;  %2423 = vmatmul.mubr.msk.f32.gmra.mxu0 %vm511_vm1, %v2852_v11  ;;  %v2922_v25 = vld [vmem:[%s2831_s20 + $0x28] sm:$0xff]  ;;  %v2930_v27 = vld [vmem:[%s2831_s20 + $0x30] sm:$0xff]  ;;  %v2954_v29 = vld [vmem:[%s2831_s20 + $0x38] sm:$0xff] }
  0x20   : > { %2429 = vmatmul.mubr.msk.f32.gmra.mxu1 %vm511_vm1, %v2855_v12  ;;  %2447 = vmatprep.mubr.msk.f32.mxu0 %vm511_vm1, %v842_v14  ;;  %v2927_v26 = vld [vmem:[%s2836_s23 + $0x28] sm:$0xff]  ;;  %v2933_v28 = vld [vmem:[%s2836_s23 + $0x30] sm:$0xff]  ;;  %v2959_v30 = vld [vmem:[%s2836_s23 + $0x38] sm:$0xff] }
  0x21   : > { %2433 = vmatprep.mubr.msk.f32.mxu1 %vm511_vm1, %v676_v13  ;;  %v1174_v32 = vld [vmem:[%s2945_s19] sm:$0xff]  ;;  %v1175_v34 = vld [vmem:[%s2945_s19 + $0x8] sm:$0xff]  ;;  %v1176_v36 = vld [vmem:[%s2945_s19 + $0x10] sm:$0xff] }
  0x22   : > { %v1011_v39 = vld [vmem:[%s2939_s25 + $0x18] sm:$0xff]  ;;  %v1012_v41 = vld [vmem:[%s2939_s25 + $0x20] sm:$0xff]  ;;  %v1013_v43 = vld [vmem:[%s2939_s25 + $0x28] sm:$0xff] }
  0x23   : > { %2448 = vmatmul.mubr.msk.f32.vlgmr.msra.gmra.mxu0 %vm511_vm1, %v2874_v16  ;;  %v1177_v40 = vld [vmem:[%s2945_s19 + $0x18] sm:$0xff]  ;;  %v1178_v42 = vld [vmem:[%s2945_s19 + $0x20] sm:$0xff]  ;;  %v1179_v44 = vld [vmem:[%s2945_s19 + $0x28] sm:$0xff] }
  0x24   : > { %2434 = vmatmul.mubr.msk.f32.vlgmr.msra.gmra.mxu1 %vm511_vm1, %v2870_v15  ;;  %2450 = vmatprep.mubr.msk.f32.mxu0 %vm511_vm1, %v2880_v18  ;;  %v1014_v45 = vld [vmem:[%s2939_s25 + $0x30] sm:$0xff]  ;;  %v1015_v47 = vld [vmem:[%s2939_s25 + $0x38] sm:$0xff]  ;;  %v1340_v49 = vld [vmem:[%s3003_s21] sm:$0xff] }
  0x25   : > { %2436 = vmatprep.mubr.msk.f32.mxu1 %vm511_vm1, %v2877_v17  ;;  %2460 = vmatpush3.msk.msra.mxu1 %vm536_vm0, %v2243_v9  ;;  %v1180_v46 = vld [vmem:[%s2945_s19 + $0x30] sm:$0xff]  ;;  %v1181_v48 = vld [vmem:[%s2945_s19 + $0x38] sm:$0xff]  ;;  %v1341_v50 = vld [vmem:[%s3003_s21 + $0x8] sm:$0xff]  ;;  %s2335_s19 = sshll.u32 %s2671_s30, 10 }
  0x26   : > { %2474 = vmatpush3.msk.msra.mxu0 %vm536_vm0, %v2253_v10  ;;  %2487 = vmatprep.subr.msk.mxu1 %vm536_vm0, %v2263_v19  ;;  %v1342_v51 = vld [vmem:[%s3003_s21 + $0x10] sm:$0xff]  ;;  %v1343_v52 = vld [vmem:[%s3003_s21 + $0x18] sm:$0xff]  ;;  %v1344_v53 = vld [vmem:[%s3003_s21 + $0x20] sm:$0xff]  ;;  %s3179_s16 = scalar_lea.hbm %s3240_s8, %s2335_s19 }
  0x27   : > { %2501 = vmatprep.subr.msk.mxu0 %vm536_vm0, %v2281_v20  ;;  %2451 = vmatmul.mubr.msk.f32.gmra.mxu0 %vm511_vm1, %v2899_v22  ;;  %v1345_v54 = vld [vmem:[%s3003_s21 + $0x28] sm:$0xff]  ;;  %v1346_v55 = vld [vmem:[%s3003_s21 + $0x30] sm:$0xff]  ;;  %v1347_v56 = vld [vmem:[%s3003_s21 + $0x38] sm:$0xff]  ;;  %s2681_s21 = smov [#allocation3]  }
  0x28   : > { %2437 = vmatmul.mubr.msk.f32.gmra.mxu1 %vm511_vm1, %v2895_v21  ;;  %2453 = vmatprep.mubr.msk.f32.mxu0 %vm511_vm1, %v2908_v24  ;;  %v2280_v57 = vld [vmem:[%s2807_s14 + $0x40] sm:$0xff]  ;;  %s2607_s14 = sshll.u32 %s2681_s21, 4  ;;  %s2608_s14 = int_to_ptr.vmem [resolvable:$false] %s2607_s14 }
  0x29   : > { %2439 = vmatprep.mubr.msk.f32.mxu1 %vm511_vm1, %v2902_v23  ;;  %v2298_v58 = vld [vmem:[%s2831_s20 + $0x40] sm:$0xff]  ;;  %s448_s20 = sand.u32 1, %s2663_s28   ;;  %s2609_s24 = scalar_lea.vmem %s2608_s14, 2048 }
  0x2a   : > { %v2316_v59 = vld [vmem:[%s2836_s23 + $0x40] sm:$0xff]  ;;  %s2203_s23 = sshll.u32 %s448_s20, 6  ;;  %s3187_s30 = scalar_lea.sflag [#allocation4], %s448_s20 }
  0x2b   : > { %2454 = vmatmul.mubr.msk.f32.gmra.mxu0 %vm511_vm1, %v2927_v26  ;;  %v2222_v60 = vld [vmem:[%s3239_s7] ss:$0 sm:$0xff]  ;;  %s450_s25 = scalar_lea.vmem [#allocation3], %s2203_s23 }
  0x2c   : > { %2440 = vmatmul.mubr.msk.f32.gmra.mxu1 %vm511_vm1, %v2922_v25  ;;  %2456 = vmatprep.mubr.msk.f32.mxu0 %vm511_vm1, %v2933_v28  ;;  %s2032_s22 = sshll.u32 %s450_s25, 4  ;;  %s3181_s22 = int_to_ptr.vmem [resolvable:$true] %s2032_s22 }
  0x2d   : > { %2442 = vmatprep.mubr.msk.f32.mxu1 %vm511_vm1, %v2930_v27  ;;  %s2603_s26 = scalar_lea.vmem %s3181_s22, 1024  ;;  %p2610_p1 = scmp.lt.s32.totalorder %s3181_s22, %s2608_s14 }
  0x2e   : > { %p2604_p12 = scmp.ne.s32.totalorder %s3181_s22, %s2603_s26  ;;  %p2611_p2 = scmp.lt.s32.totalorder %s2609_s24, %s2603_s26 }
  0x2f   : > { %2457 = vmatmul.mubr.msk.f32.gmra.mxu0 %vm511_vm1, %v2959_v30 }
  0x30   : > { %2443 = vmatmul.mubr.msk.f32.gmra.mxu1 %vm511_vm1, %v2954_v29  ;;  %2475 = vmatprep.mubr.msk.f32.mxu0 %vm511_vm1, %v1174_v32  ;;  %p2605_p13 = pnand %p2604_p12, %p2769_p4  ;;  %p2612_p3 = por %p2611_p2, %p2610_p1 }
  0x31   : > { %2461 = vmatprep.mubr.msk.f32.mxu1 %vm511_vm1, %v1008_v31 }
  0x32   : > { %p2606_p0 = pneg %p2605_p13 }
  0x33   : > { %2476 = vmatmul.mubr.msk.f32.vlgmr.msra.gmra.mxu0 %vm511_vm1, %v1175_v34 }
  0x34   : > { %2462 = vmatmul.mubr.msk.f32.vlgmr.msra.gmra.mxu1 %vm511_vm1, %v1009_v33  ;;  %2478 = vmatprep.mubr.msk.f32.mxu0 %vm511_vm1, %v1176_v36  ;;  %p2613_p5 = pnand %p2612_p3, %p2606_p0 }
  0x35   : > { %2464 = vmatprep.mubr.msk.f32.mxu1 %vm511_vm1, %v1010_v35  ;;  %2488 = vmatpush3.msk.msra.mxu1 %vm536_vm0, %v2263_v19 }
  0x36   : > { %2502 = vmatpush3.msk.msra.mxu0 %vm536_vm0, %v2281_v20  ;;  %2515 = vmatprep.subr.msk.mxu1 %vm536_vm0, %v2299_v37 }
  0x37   : > { %2529 = vmatprep.subr.msk.mxu0 %vm536_vm0, %v2317_v38  ;;  %2479 = vmatmul.mubr.msk.f32.gmra.mxu0 %vm511_vm1, %v1177_v40 }
  0x38   : > { %2465 = vmatmul.mubr.msk.f32.gmra.mxu1 %vm511_vm1, %v1011_v39  ;;  %2481 = vmatprep.mubr.msk.f32.mxu0 %vm511_vm1, %v1178_v42 }
  0x39   : > { %2467 = vmatprep.mubr.msk.f32.mxu1 %vm511_vm1, %v1012_v41 }
  0x3b   : > { %2482 = vmatmul.mubr.msk.f32.gmra.mxu0 %vm511_vm1, %v1179_v44 }
  0x3c   : > { %2468 = vmatmul.mubr.msk.f32.gmra.mxu1 %vm511_vm1, %v1013_v43  ;;  %2484 = vmatprep.mubr.msk.f32.mxu0 %vm511_vm1, %v1180_v46 }
  0x3d   : > { %2470 = vmatprep.mubr.msk.f32.mxu1 %vm511_vm1, %v1014_v45 }
  0x3f   : > { %2485 = vmatmul.mubr.msk.f32.gmra.mxu0 %vm511_vm1, %v1181_v48 }
  0x40   : > { %2471 = vmatmul.mubr.msk.f32.gmra.mxu1 %vm511_vm1, %v1015_v47  ;;  %2503 = vmatprep.mubr.msk.f32.mxu0 %vm511_vm1, %v2814_v5 }
  0x41   : > { %2489 = vmatprep.mubr.msk.f32.mxu1 %vm511_vm1, %v1340_v49 }
  0x43   : > { %2504 = vmatmul.mubr.msk.f32.vlgmr.msra.gmra.mxu0 %vm511_vm1, %v2823_v7 }
  0x44   : > { %2490 = vmatmul.mubr.msk.f32.vlgmr.msra.gmra.mxu1 %vm511_vm1, %v1341_v50  ;;  %2506 = vmatprep.mubr.msk.f32.mxu0 %vm511_vm1, %v2852_v11 }
  0x45   : > { %2492 = vmatprep.mubr.msk.f32.mxu1 %vm511_vm1, %v1342_v51  ;;  %2516 = vmatpush3.msk.msra.mxu1 %vm536_vm0, %v2299_v37 }
  0x46   : > { %2530 = vmatpush3.msk.msra.mxu0 %vm536_vm0, %v2317_v38 }
  0x47   : > { %2507 = vmatmul.mubr.msk.f32.gmra.mxu0 %vm511_vm1, %v2811_v4 }
  0x48   : > { %2493 = vmatmul.mubr.msk.f32.gmra.mxu1 %vm511_vm1, %v1343_v52  ;;  %2509 = vmatprep.mubr.msk.f32.mxu0 %vm511_vm1, %v2820_v6 }
  0x49   : > { %2495 = vmatprep.mubr.msk.f32.mxu1 %vm511_vm1, %v1344_v53 }
  0x4b   : > { %2510 = vmatmul.mubr.msk.f32.gmra.mxu0 %vm511_vm1, %v2826_v8 }
  0x4c   : > { %2496 = vmatmul.mubr.msk.f32.gmra.mxu1 %vm511_vm1, %v1345_v54  ;;  %2512 = vmatprep.mubr.msk.f32.mxu0 %vm511_vm1, %v2855_v12 }
  0x4d   : > { %2498 = vmatprep.mubr.msk.f32.mxu1 %vm511_vm1, %v1346_v55 }
  0x4f   : > { %2513 = vmatmul.mubr.msk.f32.gmra.mxu0 %vm511_vm1, %v2280_v57 }
  0x50   : > { %2499 = vmatmul.mubr.msk.f32.gmra.mxu1 %vm511_vm1, %v1347_v56  ;;  %2531 = vmatprep.mubr.msk.f32.mxu0 %vm511_vm1, %v2874_v16 }
  0x51   : > { %2517 = vmatprep.mubr.msk.f32.mxu1 %vm511_vm1, %v2870_v15 }
  0x53   : > { %2532 = vmatmul.mubr.msk.f32.vlgmr.msra.gmra.mxu0 %vm511_vm1, %v2880_v18 }
  0x54   : > { %2518 = vmatmul.mubr.msk.f32.vlgmr.msra.gmra.mxu1 %vm511_vm1, %v2877_v17  ;;  %2534 = vmatprep.mubr.msk.f32.mxu0 %vm511_vm1, %v2899_v22 }
  0x55   : > { %2520 = vmatprep.mubr.msk.f32.mxu1 %vm511_vm1, %v2895_v21 }
  0x57   : > { %2535 = vmatmul.mubr.msk.f32.gmra.mxu0 %vm511_vm1, %v2908_v24 }
  0x58   : > { %2521 = vmatmul.mubr.msk.f32.gmra.mxu1 %vm511_vm1, %v2902_v23  ;;  %2537 = vmatprep.mubr.msk.f32.mxu0 %vm511_vm1, %v2927_v26 }
  0x59   : > { %2523 = vmatprep.mubr.msk.f32.mxu1 %vm511_vm1, %v2922_v25 }
  0x5b   : > { %2538 = vmatmul.mubr.msk.f32.gmra.mxu0 %vm511_vm1, %v2933_v28 }
  0x5c   : > { %2524 = vmatmul.mubr.msk.f32.gmra.mxu1 %vm511_vm1, %v2930_v27  ;;  %2540 = vmatprep.mubr.msk.f32.mxu0 %vm511_vm1, %v2959_v30 }
  0x5d   : > { %2526 = vmatprep.mubr.msk.f32.mxu1 %vm511_vm1, %v2954_v29 }
  0x5f   : > { %2541 = vmatmul.mubr.msk.f32.gmra.mxu0 %vm511_vm1, %v2316_v59 }
  0x60   : > { %2527 = vmatmul.mubr.msk.f32.gmra.mxu1 %vm511_vm1, %v2298_v58 }
  0xdb   : > { %v2421_v61 = vpop.f32.mrf.mxu0 }
  0xdc   : > { %v2427_v62 = vpop.f32.mrf.mxu1  ;;  %v652_v63 = vadd.f32 %v2421_v61, %v2222_v60 }
  0xdd   : > { %v656_v0 = vadd.f32 %v2427_v62, %v2222_v60  ;;  %v606_v1 = vpop.f32.mrf.mxu0 }
  0xde   : > { %v626_v2 = vpop.f32.mrf.mxu1  ;;  %661 = vst.msk [vmem:[#allocation2 + $0x8] sm:$0xff] %vm659_vm2, %v652_v63  ;;  %v651_v3 = vadd.f32 %v2222_v60, %v606_v1 }
  0xdf   : > { %665 = vst.msk [vmem:[#allocation2 + $0x28] sm:$0xff] %vm659_vm2, %v656_v0  ;;  %v655_v4 = vadd.f32 %v2222_v60, %v626_v2  ;;  %v2424_v5 = vpop.f32.mrf.mxu0 }
  0xe0   : > { %v2430_v6 = vpop.f32.mrf.mxu1  ;;  %660 = vst.msk [vmem:[#allocation2] sm:$0xff] %vm659_vm2, %v651_v3  ;;  %v654_v7 = vadd.f32 %v2424_v5, %v2222_v60 }
  0xe1   : > { %664 = vst.msk [vmem:[#allocation2 + $0x20] sm:$0xff] %vm659_vm2, %v655_v4  ;;  %v658_v8 = vadd.f32 %v2430_v6, %v2222_v60  ;;  %v616_v9 = vpop.f32.mrf.mxu0 }
  0xe2   : > { %v636_v10 = vpop.f32.mrf.mxu1  ;;  %663 = vst.msk [vmem:[#allocation2 + $0x18] sm:$0xff] %vm659_vm2, %v654_v7  ;;  %v653_v11 = vadd.f32 %v2222_v60, %v616_v9 }
  0xe3   : > { %667 = vst.msk [vmem:[#allocation2 + $0x38] sm:$0xff] %vm659_vm2, %v658_v8  ;;  %v657_v12 = vadd.f32 %v2222_v60, %v636_v10  ;;  %v2449_v14 = vpop.f32.mrf.mxu0 }
  0xe4   : > { %v2435_v13 = vpop.f32.mrf.mxu1  ;;  %662 = vst.msk [vmem:[#allocation2 + $0x10] sm:$0xff] %vm659_vm2, %v653_v11 }
  0xe5   : > { %666 = vst.msk [vmem:[#allocation2 + $0x30] sm:$0xff] %vm659_vm2, %v657_v12  ;;  %v669_v15 = vld [vmem:[#allocation2 + $0x8] sm:$0xff]  ;;  %v945_v17 = vpop.f32.mrf.mxu0 }
  0xe6   : > { %v779_v16 = vpop.f32.mrf.mxu1  ;;  %v819_v18 = vadd.f32 %v2435_v13, %v669_v15  ;;  %v673_v28 = vld [vmem:[#allocation2 + $0x28] sm:$0xff] }
  0xe7   : > { %v668_v19 = vld [vmem:[#allocation2] sm:$0xff]  ;;  %v2452_v21 = vpop.f32.mrf.mxu0 }
  0xe8   : > { %v2438_v20 = vpop.f32.mrf.mxu1  ;;  %827 = vst.msk [vmem:[#allocation2 + $0x8] sm:$0xff] %vm659_vm2, %v819_v18  ;;  %v818_v22 = vadd.f32 %v779_v16, %v668_v19  ;;  %v672_v33 = vld [vmem:[#allocation2 + $0x20] sm:$0xff] }
  0xe9   : > { %v671_v23 = vld [vmem:[#allocation2 + $0x18] sm:$0xff]  ;;  %v955_v25 = vpop.f32.mrf.mxu0 }
  0xea   : > { %v789_v24 = vpop.f32.mrf.mxu1  ;;  %826 = vst.msk [vmem:[#allocation2] sm:$0xff] %vm659_vm2, %v818_v22  ;;  %v821_v26 = vadd.f32 %v2438_v20, %v671_v23  ;;  %v675_v38 = vld [vmem:[#allocation2 + $0x38] sm:$0xff] }
  0xeb   : > { %v670_v27 = vld [vmem:[#allocation2 + $0x10] sm:$0xff]  ;;  %v2455_v30 = vpop.f32.mrf.mxu0 }
  0xec   : > { %v2441_v29 = vpop.f32.mrf.mxu1  ;;  %829 = vst.msk [vmem:[#allocation2 + $0x18] sm:$0xff] %vm659_vm2, %v821_v26  ;;  %v820_v31 = vadd.f32 %v789_v24, %v670_v27  ;;  %v674_v44 = vld [vmem:[#allocation2 + $0x30] sm:$0xff] }
  0xed   : > { %v823_v32 = vadd.f32 %v2441_v29, %v673_v28  ;;  %v965_v35 = vpop.f32.mrf.mxu0 }
  0xee   : > { %v799_v34 = vpop.f32.mrf.mxu1  ;;  %828 = vst.msk [vmem:[#allocation2 + $0x10] sm:$0xff] %vm659_vm2, %v820_v31 }
  0xef   : > { %831 = vst.msk [vmem:[#allocation2 + $0x28] sm:$0xff] %vm659_vm2, %v823_v32  ;;  %v822_v36 = vadd.f32 %v799_v34, %v672_v33  ;;  %v835_v37 = vld [vmem:[#allocation2 + $0x8] sm:$0xff]  ;;  %v2458_v40 = vpop.f32.mrf.mxu0 }
  0xf0   : > { %v2444_v39 = vpop.f32.mrf.mxu1  ;;  %v985_v41 = vadd.f32 %v2449_v14, %v835_v37 }
  0xf1   : > { %830 = vst.msk [vmem:[#allocation2 + $0x20] sm:$0xff] %vm659_vm2, %v822_v36  ;;  %v825_v42 = vadd.f32 %v2444_v39, %v675_v38  ;;  %v834_v43 = vld [vmem:[#allocation2] sm:$0xff]  ;;  %v975_v46 = vpop.f32.mrf.mxu0 }
  0xf2   : > { %v809_v45 = vpop.f32.mrf.mxu1  ;;  %993 = vst.msk [vmem:[#allocation2 + $0x8] sm:$0xff] %vm659_vm2, %v985_v41  ;;  %v984_v47 = vadd.f32 %v945_v17, %v834_v43 }
  0xf3   : > { %833 = vst.msk [vmem:[#allocation2 + $0x38] sm:$0xff] %vm659_vm2, %v825_v42  ;;  %v824_v48 = vadd.f32 %v809_v45, %v674_v44  ;;  %v837_v49 = vld [vmem:[#allocation2 + $0x18] sm:$0xff]  ;;  %v2477_v51 = vpop.f32.mrf.mxu0 }
  0xf4   : > { %v2463_v50 = vpop.f32.mrf.mxu1  ;;  %992 = vst.msk [vmem:[#allocation2] sm:$0xff] %vm659_vm2, %v984_v47  ;;  %v987_v52 = vadd.f32 %v2452_v21, %v837_v49 }
  0xf5   : > { %832 = vst.msk [vmem:[#allocation2 + $0x30] sm:$0xff] %vm659_vm2, %v824_v48  ;;  %v836_v53 = vld [vmem:[#allocation2 + $0x10] sm:$0xff]  ;;  %v1277_v56 = vpop.f32.mrf.mxu0 }
  0xf6   : > { %v839_v54 = vld [vmem:[#allocation2 + $0x28] sm:$0xff]  ;;  %v1111_v55 = vpop.f32.mrf.mxu1  ;;  %995 = vst.msk [vmem:[#allocation2 + $0x18] sm:$0xff] %vm659_vm2, %v987_v52  ;;  %v986_v57 = vadd.f32 %v955_v25, %v836_v53 }
  0xf7   : > { %v989_v58 = vadd.f32 %v2455_v30, %v839_v54  ;;  %v2480_v61 = vpop.f32.mrf.mxu0 }
  0xf8   : > { %v838_v59 = vld [vmem:[#allocation2 + $0x20] sm:$0xff]  ;;  %v2466_v60 = vpop.f32.mrf.mxu1  ;;  %994 = vst.msk [vmem:[#allocation2 + $0x10] sm:$0xff] %vm659_vm2, %v986_v57 }
  0xf9   : > { %997 = vst.msk [vmem:[#allocation2 + $0x28] sm:$0xff] %vm659_vm2, %v989_v58  ;;  %v988_v62 = vadd.f32 %v965_v35, %v838_v59  ;;  %v1001_v63 = vld [vmem:[#allocation2 + $0x8] sm:$0xff]  ;;  %v1287_v2 = vpop.f32.mrf.mxu0 }
  0xfa   : > { %v841_v0 = vld [vmem:[#allocation2 + $0x38] sm:$0xff]  ;;  %v1121_v1 = vpop.f32.mrf.mxu1  ;;  %v1151_v3 = vadd.f32 %v2463_v50, %v1001_v63 }
  0xfb   : > { %996 = vst.msk [vmem:[#allocation2 + $0x20] sm:$0xff] %vm659_vm2, %v988_v62  ;;  %v991_v4 = vadd.f32 %v2458_v40, %v841_v0  ;;  %v1000_v5 = vld [vmem:[#allocation2] sm:$0xff]  ;;  %v2483_v8 = vpop.f32.mrf.mxu0 }
  0xfc   : > { %v840_v6 = vld [vmem:[#allocation2 + $0x30] sm:$0xff]  ;;  %v2469_v7 = vpop.f32.mrf.mxu1  ;;  %1159 = vst.msk [vmem:[#allocation2 + $0x8] sm:$0xff] %vm659_vm2, %v1151_v3  ;;  %v1150_v9 = vadd.f32 %v1111_v55, %v1000_v5 }
  0xfd   : > { %999 = vst.msk [vmem:[#allocation2 + $0x38] sm:$0xff] %vm659_vm2, %v991_v4  ;;  %v990_v10 = vadd.f32 %v975_v46, %v840_v6  ;;  %v1003_v11 = vld [vmem:[#allocation2 + $0x18] sm:$0xff]  ;;  %v1297_v13 = vpop.f32.mrf.mxu0 }
  0xfe   : > { %v1131_v12 = vpop.f32.mrf.mxu1  ;;  %1158 = vst.msk [vmem:[#allocation2] sm:$0xff] %vm659_vm2, %v1150_v9  ;;  %v1153_v14 = vadd.f32 %v2466_v60, %v1003_v11 }
  0xff   : > { %998 = vst.msk [vmem:[#allocation2 + $0x30] sm:$0xff] %vm659_vm2, %v990_v10  ;;  %v1002_v15 = vld [vmem:[#allocation2 + $0x10] sm:$0xff]  ;;  %v2486_v18 = vpop.f32.mrf.mxu0 }
 0x100   : > { %v1005_v16 = vld [vmem:[#allocation2 + $0x28] sm:$0xff]  ;;  %v2472_v17 = vpop.f32.mrf.mxu1  ;;  %1161 = vst.msk [vmem:[#allocation2 + $0x18] sm:$0xff] %vm659_vm2, %v1153_v14  ;;  %v1152_v19 = vadd.f32 %v1121_v1, %v1002_v15 }
 0x101   : > { %v1155_v20 = vadd.f32 %v2469_v7, %v1005_v16  ;;  %v1307_v23 = vpop.f32.mrf.mxu0 }
 0x102   : > { %v1004_v21 = vld [vmem:[#allocation2 + $0x20] sm:$0xff]  ;;  %v1141_v22 = vpop.f32.mrf.mxu1  ;;  %1160 = vst.msk [vmem:[#allocation2 + $0x10] sm:$0xff] %vm659_vm2, %v1152_v19 }
 0x103   : > { %1163 = vst.msk [vmem:[#allocation2 + $0x28] sm:$0xff] %vm659_vm2, %v1155_v20  ;;  %v1154_v24 = vadd.f32 %v1131_v12, %v1004_v21  ;;  %v1167_v25 = vld [vmem:[#allocation2 + $0x8] sm:$0xff]  ;;  %v3111_v28 = vpop.f32.mrf.mxu0 }
 0x104   : > { %v1007_v26 = vld [vmem:[#allocation2 + $0x38] sm:$0xff]  ;;  %v2491_v27 = vpop.f32.mrf.mxu1  ;;  %v1317_v29 = vadd.f32 %v2477_v51, %v1167_v25 }
 0x105   : > { %1162 = vst.msk [vmem:[#allocation2 + $0x20] sm:$0xff] %vm659_vm2, %v1154_v24  ;;  %v1157_v30 = vadd.f32 %v2472_v17, %v1007_v26  ;;  %v1166_v31 = vld [vmem:[#allocation2] sm:$0xff]  ;;  %v3114_v34 = vpop.f32.mrf.mxu0 }
 0x106   : > { %v1006_v32 = vld [vmem:[#allocation2 + $0x30] sm:$0xff]  ;;  %v1443_v33 = vpop.f32.mrf.mxu1  ;;  %1325 = vst.msk [vmem:[#allocation2 + $0x8] sm:$0xff] %vm659_vm2, %v1317_v29  ;;  %v1316_v35 = vadd.f32 %v1277_v56, %v1166_v31 }
 0x107   : > { %1165 = vst.msk [vmem:[#allocation2 + $0x38] sm:$0xff] %vm659_vm2, %v1157_v30  ;;  %v1156_v36 = vadd.f32 %v1141_v22, %v1006_v32  ;;  %v1169_v37 = vld [vmem:[#allocation2 + $0x18] sm:$0xff]  ;;  %v3118_v39 = vpop.f32.mrf.mxu0 }
 0x108   : > { %v2494_v38 = vpop.f32.mrf.mxu1  ;;  %1324 = vst.msk [vmem:[#allocation2] sm:$0xff] %vm659_vm2, %v1316_v35  ;;  %v1319_v40 = vadd.f32 %v2480_v61, %v1169_v37 }
 0x109   : > { %1164 = vst.msk [vmem:[#allocation2 + $0x30] sm:$0xff] %vm659_vm2, %v1156_v36  ;;  %v1168_v41 = vld [vmem:[#allocation2 + $0x10] sm:$0xff]  ;;  %v3122_v44 = vpop.f32.mrf.mxu0 }
 0x10a   : > { %v1171_v42 = vld [vmem:[#allocation2 + $0x28] sm:$0xff]  ;;  %v1453_v43 = vpop.f32.mrf.mxu1  ;;  %1327 = vst.msk [vmem:[#allocation2 + $0x18] sm:$0xff] %vm659_vm2, %v1319_v40  ;;  %v1318_v45 = vadd.f32 %v1287_v2, %v1168_v41 }
 0x10b   : > { %v1321_v46 = vadd.f32 %v2483_v8, %v1171_v42  ;;  %v2511_v53 = vpop.f32.mrf.mxu0 }
 0x10c   : > { %v1170_v47 = vld [vmem:[#allocation2 + $0x20] sm:$0xff]  ;;  %v2497_v48 = vpop.f32.mrf.mxu1  ;;  %1326 = vst.msk [vmem:[#allocation2 + $0x10] sm:$0xff] %vm659_vm2, %v1318_v45 }
 0x10d   : > { %1329 = vst.msk [vmem:[#allocation2 + $0x28] sm:$0xff] %vm659_vm2, %v1321_v46  ;;  %v1320_v49 = vadd.f32 %v1297_v13, %v1170_v47  ;;  %v1333_v50 = vld [vmem:[#allocation2 + $0x8] sm:$0xff]  ;;  %v1630_v63 = vpop.f32.mrf.mxu0 }
 0x10e   : > { %v1173_v51 = vld [vmem:[#allocation2 + $0x38] sm:$0xff]  ;;  %v1463_v52 = vpop.f32.mrf.mxu1  ;;  %v1483_v54 = vadd.f32 %v2491_v27, %v1333_v50 }
 0x10f   : > { %1328 = vst.msk [vmem:[#allocation2 + $0x20] sm:$0xff] %vm659_vm2, %v1320_v49  ;;  %v1323_v55 = vadd.f32 %v2486_v18, %v1173_v51  ;;  %v1332_v56 = vld [vmem:[#allocation2] sm:$0xff]  ;;  %v2514_v7 = vpop.f32.mrf.mxu0 }
 0x110   : > { %v1172_v57 = vld [vmem:[#allocation2 + $0x30] sm:$0xff]  ;;  %v2500_v58 = vpop.f32.mrf.mxu1  ;;  %1491 = vst.msk [vmem:[#allocation2 + $0x8] sm:$0xff] %vm659_vm2, %v1483_v54  ;;  %v1482_v59 = vadd.f32 %v1443_v33, %v1332_v56 }
 0x111   : > { %1331 = vst.msk [vmem:[#allocation2 + $0x38] sm:$0xff] %vm659_vm2, %v1323_v55  ;;  %v1322_v60 = vadd.f32 %v1307_v23, %v1172_v57  ;;  %v1335_v61 = vld [vmem:[#allocation2 + $0x18] sm:$0xff]  ;;  %v1640_v16 = vpop.f32.mrf.mxu0 }
 0x112   : > { %v1473_v62 = vpop.f32.mrf.mxu1  ;;  %1490 = vst.msk [vmem:[#allocation2] sm:$0xff] %vm659_vm2, %v1482_v59  ;;  %v1485_v0 = vadd.f32 %v2494_v38, %v1335_v61 }
 0x113   : > { %1330 = vst.msk [vmem:[#allocation2 + $0x30] sm:$0xff] %vm659_vm2, %v1322_v60  ;;  %v1334_v1 = vld [vmem:[#allocation2 + $0x10] sm:$0xff]  ;;  %v2533_v21 = vpop.f32.mrf.mxu0 }
 0x114   : > { %v1337_v2 = vld [vmem:[#allocation2 + $0x28] sm:$0xff]  ;;  %v2519_v3 = vpop.f32.mrf.mxu1  ;;  %1493 = vst.msk [vmem:[#allocation2 + $0x18] sm:$0xff] %vm659_vm2, %v1485_v0  ;;  %v1484_v4 = vadd.f32 %v1453_v43, %v1334_v1 }
 0x115   : > { %v1487_v5 = vadd.f32 %v2497_v48, %v1337_v2  ;;  %v1944_v29 = vpop.f32.mrf.mxu0 }
 0x116   : > { %v1336_v6 = vld [vmem:[#allocation2 + $0x20] sm:$0xff]  ;;  %v1777_v8 = vpop.f32.mrf.mxu1  ;;  %1492 = vst.msk [vmem:[#allocation2 + $0x10] sm:$0xff] %vm659_vm2, %v1484_v4 }
 0x117   : > { %1495 = vst.msk [vmem:[#allocation2 + $0x28] sm:$0xff] %vm659_vm2, %v1487_v5  ;;  %v1486_v9 = vadd.f32 %v1463_v52, %v1336_v6  ;;  %v1499_v10 = vld [vmem:[#allocation2 + $0x8] sm:$0xff]  ;;  %v2536_v38 = vpop.f32.mrf.mxu0 }
 0x118   : > { %v1339_v11 = vld [vmem:[#allocation2 + $0x38] sm:$0xff]  ;;  %v1650_v12 = vadd.f32 %v3111_v28, %v1499_v10  ;;  %v2522_v17 = vpop.f32.mrf.mxu1 }
 0x119   : > { %1494 = vst.msk [vmem:[#allocation2 + $0x20] sm:$0xff] %vm659_vm2, %v1486_v9  ;;  %v1489_v13 = vadd.f32 %v2500_v58, %v1339_v11  ;;  %v1498_v14 = vld [vmem:[#allocation2] sm:$0xff]  ;;  %v1954_v46 = vpop.f32.mrf.mxu0 }
 0x11a   : > { %v1338_v15 = vld [vmem:[#allocation2 + $0x30] sm:$0xff]  ;;  %1658 = vst.msk [vmem:[#allocation2 + $0x8] sm:$0xff] %vm659_vm2, %v1650_v12  ;;  %v1649_v18 = vadd.f32 %v3114_v34, %v1498_v14  ;;  %v1787_v25 = vpop.f32.mrf.mxu1 }
 0x11b   : > { %1497 = vst.msk [vmem:[#allocation2 + $0x38] sm:$0xff] %vm659_vm2, %v1489_v13  ;;  %v1488_v19 = vadd.f32 %v1473_v62, %v1338_v15  ;;  %v1501_v20 = vld [vmem:[#allocation2 + $0x18] sm:$0xff]  ;;  %v2539_v54 = vpop.f32.mrf.mxu0 }
 0x11c   : > { %1657 = vst.msk [vmem:[#allocation2] sm:$0xff] %vm659_vm2, %v1649_v18  ;;  %v1652_v22 = vadd.f32 %v3118_v39, %v1501_v20  ;;  %v2525_v33 = vpop.f32.mrf.mxu1 }
 0x11d   : > { %1496 = vst.msk [vmem:[#allocation2 + $0x30] sm:$0xff] %vm659_vm2, %v1488_v19  ;;  %v1500_v23 = vld [vmem:[#allocation2 + $0x10] sm:$0xff] }
 0x11e   : > { %v1503_v24 = vld [vmem:[#allocation2 + $0x28] sm:$0xff]  ;;  %1660 = vst.msk [vmem:[#allocation2 + $0x18] sm:$0xff] %vm659_vm2, %v1652_v22  ;;  %v1651_v26 = vadd.f32 %v3122_v44, %v1500_v23  ;;  %v1797_v42 = vpop.f32.mrf.mxu1 }
 0x11f   : > { %v1654_v27 = vadd.f32 %v2511_v53, %v1503_v24 }
 0x120   : > { %v1502_v28 = vld [vmem:[#allocation2 + $0x20] sm:$0xff]  ;;  %1659 = vst.msk [vmem:[#allocation2 + $0x10] sm:$0xff] %vm659_vm2, %v1651_v26  ;;  %v2528_v50 = vpop.f32.mrf.mxu1 }
 0x121   : > { %1662 = vst.msk [vmem:[#allocation2 + $0x28] sm:$0xff] %vm659_vm2, %v1654_v27  ;;  %v1653_v30 = vadd.f32 %v1630_v63, %v1502_v28  ;;  %v1666_v31 = vld [vmem:[#allocation2 + $0x8] sm:$0xff]  ;;  %v1964_v63 = vpop.f32.mrf.mxu0 }
 0x122   : > { %v1505_v32 = vld [vmem:[#allocation2 + $0x38] sm:$0xff]  ;;  %v1817_v34 = vadd.f32 %v2519_v3, %v1666_v31  ;;  %v1807_v59 = vpop.f32.mrf.mxu1 }
 0x123   : > { %1661 = vst.msk [vmem:[#allocation2 + $0x20] sm:$0xff] %vm659_vm2, %v1653_v30  ;;  %v1656_v35 = vadd.f32 %v2514_v7, %v1505_v32  ;;  %v1665_v36 = vld [vmem:[#allocation2] sm:$0xff]  ;;  %v2542_v6 = vpop.f32.mrf.mxu0 }
 0x124   : > { %v1504_v37 = vld [vmem:[#allocation2 + $0x30] sm:$0xff]  ;;  %1825 = vst.msk [vmem:[#allocation2 + $0x8] sm:$0xff] %vm659_vm2, %v1817_v34  ;;  %v1816_v39 = vadd.f32 %v1777_v8, %v1665_v36 }
 0x125   : > { %1664 = vst.msk [vmem:[#allocation2 + $0x38] sm:$0xff] %vm659_vm2, %v1656_v35  ;;  %v1655_v40 = vadd.f32 %v1640_v16, %v1504_v37  ;;  %v1668_v41 = vld [vmem:[#allocation2 + $0x18] sm:$0xff]  ;;  %v1974_v13 = vpop.f32.mrf.mxu0 }
 0x126   : > { %1824 = vst.msk [vmem:[#allocation2] sm:$0xff] %vm659_vm2, %v1816_v39  ;;  %v1819_v43 = vadd.f32 %v2522_v17, %v1668_v41 }
 0x127   : > { %1663 = vst.msk [vmem:[#allocation2 + $0x30] sm:$0xff] %vm659_vm2, %v1655_v40  ;;  %v1667_v44 = vld [vmem:[#allocation2 + $0x10] sm:$0xff] }
 0x128   : > { %v1670_v45 = vld [vmem:[#allocation2 + $0x28] sm:$0xff]  ;;  %1827 = vst.msk [vmem:[#allocation2 + $0x18] sm:$0xff] %vm659_vm2, %v1819_v43  ;;  %v1818_v47 = vadd.f32 %v1787_v25, %v1667_v44 }
 0x129   : > { %v1821_v48 = vadd.f32 %v2525_v33, %v1670_v45 }
 0x12a   : > { %v1669_v49 = vld [vmem:[#allocation2 + $0x20] sm:$0xff]  ;;  %1826 = vst.msk [vmem:[#allocation2 + $0x10] sm:$0xff] %vm659_vm2, %v1818_v47 }
 0x12b   : > { %1829 = vst.msk [vmem:[#allocation2 + $0x28] sm:$0xff] %vm659_vm2, %v1821_v48  ;;  %v1820_v51 = vadd.f32 %v1797_v42, %v1669_v49  ;;  %v1833_v52 = vld [vmem:[#allocation2 + $0x8] sm:$0xff] }
 0x12c   : > { %v1672_v53 = vld [vmem:[#allocation2 + $0x38] sm:$0xff]  ;;  %v1984_v55 = vadd.f32 %v2533_v21, %v1833_v52 }
 0x12d   : > { %1828 = vst.msk [vmem:[#allocation2 + $0x20] sm:$0xff] %vm659_vm2, %v1820_v51  ;;  %v1823_v56 = vadd.f32 %v2528_v50, %v1672_v53  ;;  %v1832_v57 = vld [vmem:[#allocation2] sm:$0xff] }
 0x12e   : > { %v1671_v58 = vld [vmem:[#allocation2 + $0x30] sm:$0xff]  ;;  %1992 = vst.msk [vmem:[#allocation2 + $0x8] sm:$0xff] %vm659_vm2, %v1984_v55  ;;  %v1983_v60 = vadd.f32 %v1944_v29, %v1832_v57 }
 0x12f   : > { %1831 = vst.msk [vmem:[#allocation2 + $0x38] sm:$0xff] %vm659_vm2, %v1823_v56  ;;  %v1822_v61 = vadd.f32 %v1807_v59, %v1671_v58  ;;  %v1835_v62 = vld [vmem:[#allocation2 + $0x18] sm:$0xff] }
 0x130   : > { %1991 = vst.msk [vmem:[#allocation2] sm:$0xff] %vm659_vm2, %v1983_v60  ;;  %v1986_v0 = vadd.f32 %v2536_v38, %v1835_v62 }
 0x131   : > { %1830 = vst.msk [vmem:[#allocation2 + $0x30] sm:$0xff] %vm659_vm2, %v1822_v61  ;;  %v1834_v1 = vld [vmem:[#allocation2 + $0x10] sm:$0xff] }
 0x132   : > { %v1837_v2 = vld [vmem:[#allocation2 + $0x28] sm:$0xff]  ;;  %1994 = vst.msk [vmem:[#allocation2 + $0x18] sm:$0xff] %vm659_vm2, %v1986_v0  ;;  %v1985_v3 = vadd.f32 %v1954_v46, %v1834_v1 }
 0x133   : > { %v1988_v4 = vadd.f32 %v2539_v54, %v1837_v2 }
 0x134   : > { %v1836_v5 = vld [vmem:[#allocation2 + $0x20] sm:$0xff]  ;;  %1993 = vst.msk [vmem:[#allocation2 + $0x10] sm:$0xff] %vm659_vm2, %v1985_v3 }
 0x135   : > { %1996 = vst.msk [vmem:[#allocation2 + $0x28] sm:$0xff] %vm659_vm2, %v1988_v4  ;;  %v1987_v7 = vadd.f32 %v1964_v63, %v1836_v5  ;;  %v2000_v8 = vld [vmem:[#allocation2 + $0x8] sm:$0xff] }
 0x136   : > { %v1839_v9 = vld [vmem:[#allocation2 + $0x38] sm:$0xff]  ;;  %2008 = vst.msk [vmem:[%s450_s25 + $0x8] sm:$0xff] %vm659_vm2, %v2000_v8 }
 0x137   : > { %1995 = vst.msk [vmem:[#allocation2 + $0x20] sm:$0xff] %vm659_vm2, %v1987_v7  ;;  %v1990_v10 = vadd.f32 %v2542_v6, %v1839_v9  ;;  %v1999_v11 = vld [vmem:[#allocation2] sm:$0xff] }
 0x138   : > { %v1838_v12 = vld [vmem:[#allocation2 + $0x30] sm:$0xff]  ;;  %2007 = vst.msk [vmem:[%s450_s25] sm:$0xff] %vm659_vm2, %v1999_v11 }
 0x139   : > { %1998 = vst.msk [vmem:[#allocation2 + $0x38] sm:$0xff] %vm659_vm2, %v1990_v10  ;;  %v1989_v14 = vadd.f32 %v1974_v13, %v1838_v12  ;;  %v2002_v15 = vld [vmem:[#allocation2 + $0x18] sm:$0xff] }
 0x13a   : > { %2010 = vst.msk [vmem:[%s450_s25 + $0x18] sm:$0xff] %vm659_vm2, %v2002_v15 }
 0x13b   : > { %1997 = vst.msk [vmem:[#allocation2 + $0x30] sm:$0xff] %vm659_vm2, %v1989_v14  ;;  %v2001_v16 = vld [vmem:[#allocation2 + $0x10] sm:$0xff] }
 0x13c   : > { %v2004_v17 = vld [vmem:[#allocation2 + $0x28] sm:$0xff]  ;;  %2009 = vst.msk [vmem:[%s450_s25 + $0x10] sm:$0xff] %vm659_vm2, %v2001_v16 }
 0x13d   : > { %2012 = vst.msk [vmem:[%s450_s25 + $0x28] sm:$0xff] %vm659_vm2, %v2004_v17 }
 0x13e   : > { %v2003_v18 = vld [vmem:[#allocation2 + $0x20] sm:$0xff] }
 0x13f   : > { %2011 = vst.msk [vmem:[%s450_s25 + $0x20] sm:$0xff] %vm659_vm2, %v2003_v18 }
 0x140   : > { %v2006_v19 = vld [vmem:[#allocation2 + $0x38] sm:$0xff] }
 0x141   : > { %2014 = vst.msk [vmem:[%s450_s25 + $0x38] sm:$0xff] %vm659_vm2, %v2006_v19 }
 0x142   : > { %v2005_v20 = vld [vmem:[#allocation2 + $0x30] sm:$0xff] }
 0x143   : > { %2013 = vst.msk [vmem:[%s450_s25 + $0x30] sm:$0xff] %vm659_vm2, %v2005_v20 }
 0x144   : > { %2616 = shalt.err (!%p2613_p5)
}
 0x145   : > { %s2617_s20 = scalar_lea.hbm %s3179_s16, 1024  ;;  %s2621_s19 = scalar_lea.hbm %s3240_s8, 2048 }
 0x146   : > { %p2618_p6 = scmp.ne.s32.totalorder %s3179_s16, %s2617_s20  ;;  %p2622_p10 = scmp.lt.s32.totalorder %s3179_s16, %s3240_s8 }
 0x147   : > { %p2623_p11 = scmp.lt.s32.totalorder %s2621_s19, %s2617_s20 }
 0x148   : > { %p2619_p7 = pnand %p2618_p6, %p2769_p4 }
 0x149   : > { %p2624_p12 = por %p2623_p11, %p2622_p10 }
 0x14a   : > { %p2620_p9 = pneg %p2619_p7 }
 0x14c   : > { %p2625_p13 = pnand %p2624_p12, %p2620_p9 }
 0x14e   : > { %2628 = shalt.err (!%p2625_p13)
}
 0x14f   : > { %s2682_s26 = smov 128   ;;  %s2683_s21 = smov 8  }
 0x150   : > { %2546 = dma.vmem_to_hbm [thread:$0]  (%p2769_p4), %s3181_s22, 1024, %s3179_s16, %s3187_s30, %s2682_s26, %s2682_s26, %s2683_s21  }
 0x151 PF: > { %p2552_p0 = scmp.ge.s32.totalorder %s2679_s10, 2  ;;  %s2047_s14 = sand.u32 1, %s2659_s27  }
 0x152   : > { %s2048_s24 = scalar_lea.sflag [#allocation4], %s2047_s14 }
 0x153   : > { %p2549_p1 = pnand %p2552_p0, %p2776_p8 }
 0x155   : > { %p2550_p2 = pneg %p2549_p1 }
 0x157   : > { %2654 = dma.done.wait (%p2550_p2), %s2048_s24, 1024  }
 0x158   : > { %2656 = vsyncadd (%p2550_p2), %s2048_s24, 4294966272  ;;  %s21_s10 = sadd.s32 1, %s2679_s10   ;;  %s3243_s27 = smov %s2663_s28 }
 0x159   : > { %p18_p3 = scmp.ge.s32.totalorder %s21_s10, 4   ;;  %s3244_s28 = smov %s2667_s29 }
 0x15a   : > { %s3245_s29 = smov %s2782_s18  ;;  %s3246_s30 = smov %s2675_s9 }
 0x15b   : > { %s3247_s9 = smov %s3249_s13  ;;  %20 = sbr.rel (!%p18_p3) target bundleno = 4 (0x4), region = 119 }
 0x160   :  { %2053 = vsyncpa [#allocation4], 1 }
 0x161   :  { %2055 = vsyncpa [#allocation4 + $0x1], 1 }

</bundles_post_ra>
